<compile_context>
chip_gen: v7x
topology: tpu7x:2x2x1
jax: 0.10.0
libtpu: 0.0.40
codegen_flags: <defaults>
</compile_context>

<pallas_src>
import jax
import jax.numpy as jnp
from jax import lax
from jax.experimental import pallas as pl
from jax.experimental.pallas import tpu as pltpu


def _round_up(x, m):
    return ((x + m - 1) // m) * m


def gru_text_encoder_kernel(
    tok_ref,    # (T*BB, 1) int32   token ids, t-major / b-minor row order
    emb_ref,    # (V1p, HP) bf16    zero-padded embedding table
    wi_ref,     # (HP, 3HP) bf16    fused, lane-padded [W_ir | W_iz | W_in]
    wh_ref,     # (HP, 3HP) bf16    fused, lane-padded [W_hr | W_hz | W_hn]
    bi_ref,     # (1, 3HP)  f32     fused, lane-padded [b_ir | b_iz | b_in]
    bh_ref,     # (1, 3HP)  f32     fused, lane-padded [b_hr | b_hz | b_hn]
    h_out_ref,  # (BB, HP)  f32     final hidden state (lane-dense slab)
    i_scr,      # (T, BB, 3HP) f32  VMEM scratch: staged input projections
):
    TB = tok_ref.shape[0]
    V1p, HP = emb_ref.shape
    BB = h_out_ref.shape[0]
    T = TB // BB
    H3 = 3 * HP

    # Two independent recurrence chains (if sublane-aligned) so the scheduler can
    # hide one chain's MXU result latency behind the other's gate math.
    n_chains = 2 if (BB % 16 == 0) else 1
    CB = BB // n_chains

    # ---- hoisted: embedding lookup + input projections for the whole sequence
    tok = tok_ref[...]                                            # (TB, 1)
    iota_v = lax.broadcasted_iota(jnp.int32, (TB, V1p), 1)        # (TB, V1p)
    onehot = (iota_v == tok).astype(jnp.bfloat16)                 # exact 0/1 in bf16
    x_all = jnp.dot(onehot, emb_ref[...],
                    preferred_element_type=jnp.float32)           # (TB, HP)
    i_all = jnp.dot(x_all.astype(jnp.bfloat16), wi_ref[...],
                    preferred_element_type=jnp.float32) + bi_ref[...]  # (TB, 3HP) f32
    i_scr[...] = i_all.reshape(T, BB, H3)

    # ---- hoisted loop invariants
    wh = wh_ref[...]                                              # (HP, 3HP) bf16
    bh_b = jnp.broadcast_to(bh_ref[...], (CB, H3))                # broadcast once

    def gates(i_t, g, h_prev):
        # all slices are at multiples of HP (=128): lane-group aligned, no shuffles
        rz = jax.nn.sigmoid(i_t[:, : 2 * HP] + g[:, : 2 * HP])
        z = rz[:, HP:]
        # PyTorch GRU: b_hn (inside g[:, 2HP:]) stays inside the r*(...) term
        n = jnp.tanh(i_t[:, 2 * HP:] + rz[:, :HP] * g[:, 2 * HP:])
        return n + z * (h_prev - n)

    def step(i_step, hs):
        # push all chains' hidden matmuls (independent), then do the gate math
        gs = [jnp.dot(hs[c].astype(jnp.bfloat16), wh,
                      preferred_element_type=jnp.float32) + bh_b
              for c in range(n_chains)]
        return tuple(
            gates(i_step[c * CB:(c + 1) * CB, :], gs[c], hs[c])
            for c in range(n_chains))

    hs = tuple(jnp.zeros((CB, HP), jnp.float32) for _ in range(n_chains))
    if T <= 64:
        # fully unrolled: static i_scr[t] loads, full scheduler visibility
        for t in range(T):
            hs = step(i_scr[t], hs)
    else:
        hs = lax.fori_loop(0, T, lambda t, hh: step(i_scr[t], hh), hs)

    for c in range(n_chains):
        h_out_ref[c * CB:(c + 1) * CB, :] = hs[c]


def text_encoder_forward(tokens, emb_table, gru_params, *,
                         max_block_b=256, num_cores=1):
    """tokens: (B, T) int32. Returns torch-equivalent `h.squeeze()` of the GRU (f32).

    max_block_b: rows fed to the MXU per recurrence matmul (128 fills a v5e MXU,
        256 fills v6e/v7x).
    num_cores: set 2 on v7x so the ("parallel",) batch-block grid axis shards
        across both TensorCores; keep 1 on single-TC chips (v5e/v6e).
    """
    wir, wiz, win, whr, whz, whn, bir, biz, bin_, bhr, bhz, bhn = gru_params
    B, T = tokens.shape
    V1, H = emb_table.shape
    HP = _round_up(H, 128)          # lane-pad hidden so every gate owns a 128-lane group
    V1p = _round_up(V1, 128)        # lane-dense one-hot
    H3 = 3 * HP

    def pad_w(w):                   # (H, H) -> (HP, HP), zeros elsewhere
        return jnp.zeros((HP, HP), jnp.float32).at[:H, :H].set(w)

    def pad_b(b):                   # (1, H) -> (1, HP)
        return jnp.zeros((1, HP), jnp.float32).at[:, :H].set(b)

    # fused gate weights/biases (r | z | n), lane-padded; MXU operands in bf16
    wi = jnp.concatenate([pad_w(wir), pad_w(wiz), pad_w(win)], axis=1).astype(jnp.bfloat16)
    wh = jnp.concatenate([pad_w(whr), pad_w(whz), pad_w(whn)], axis=1).astype(jnp.bfloat16)
    bi = jnp.concatenate([pad_b(bir), pad_b(biz), pad_b(bin_)], axis=1)   # f32
    bh = jnp.concatenate([pad_b(bhr), pad_b(bhz), pad_b(bhn)], axis=1)    # f32
    emb_p = (jnp.zeros((V1p, HP), jnp.float32)
             .at[:V1, :H].set(emb_table).astype(jnp.bfloat16))

    # batch-block sizing: fill the MXU M dimension; split only across cores
    b_pad = _round_up(B, 8)
    block_b = min(max_block_b, _round_up(-(-b_pad // num_cores), 8))
    b_pad = _round_up(b_pad, block_b)
    nb = b_pad // block_b

    # layout plumbing wrapper-side: one (T*block_b, 1) t-major id block per batch block
    tokens_p = jnp.zeros((b_pad, T), jnp.int32).at[:B].set(tokens.astype(jnp.int32))
    tok_blocks = (tokens_p.reshape(nb, block_b, T)
                  .transpose(0, 2, 1)
                  .reshape(nb, T * block_b, 1))

    h_pad = pl.pallas_call(
        gru_text_encoder_kernel,
        out_shape=jax.ShapeDtypeStruct((b_pad, HP), jnp.float32),
        grid=(nb,),
        in_specs=[
            pl.BlockSpec((None, T * block_b, 1), lambda b: (b, 0, 0)),  # tokens
            pl.BlockSpec((V1p, HP), lambda b: (0, 0)),                  # embedding (bf16)
            pl.BlockSpec((HP, H3), lambda b: (0, 0)),                   # W_i fused (bf16)
            pl.BlockSpec((HP, H3), lambda b: (0, 0)),                   # W_h fused (bf16)
            pl.BlockSpec((1, H3), lambda b: (0, 0)),                    # b_i fused
            pl.BlockSpec((1, H3), lambda b: (0, 0)),                    # b_h fused
        ],
        out_specs=pl.BlockSpec((block_b, HP), lambda b: (b, 0)),        # lane-dense store
        scratch_shapes=[pltpu.VMEM((T, block_b, H3), jnp.float32)],
        compiler_params=pltpu.CompilerParams(
            dimension_semantics=("parallel",),
            vmem_limit_bytes=32 * 1024 * 1024),
    )(tok_blocks, emb_p, wi, wh, bi, bh)

    h = h_pad[:B, :H]
    # mirrors torch `h.squeeze()` (note: collapses batch dim when B == 1)
    return jnp.squeeze(h)


def reference_forward(tokens, emb_table, gru_params):
    """Pure-JAX f32 reference mirroring torch.nn.GRU(batch_first=True)."""
    wir, wiz, win, whr, whz, whn, bir, biz, bin_, bhr, bhz, bhn = gru_params
    x = emb_table[tokens]                      # (B, T, H)
    B, T, H = x.shape

    def cell(h, x_t):
        i_r = x_t @ wir + bir
        i_z = x_t @ wiz + biz
        i_n = x_t @ win + bin_
        h_r = h @ whr + bhr
        h_z = h @ whz + bhz
        h_n = h @ whn + bhn
        r = jax.nn.sigmoid(i_r + h_r)
        z = jax.nn.sigmoid(i_z + h_z)
        n = jnp.tanh(i_n + r * h_n)
        return (1.0 - z) * n + z * h, None

    h0 = jnp.zeros((B, H), dtype=jnp.float32)
    hT, _ = lax.scan(cell, h0, jnp.transpose(x, (1, 0, 2)))
    return jnp.squeeze(hT)


def init_params(key, vocab_plus_one, hidden):
    """Deterministic synthetic parameters (PyTorch-like uniform init)."""
    k = 1.0 / jnp.sqrt(jnp.float32(hidden))
    keys = jax.random.split(key, 13)
    emb_table = jax.random.normal(keys[0], (vocab_plus_one, hidden), jnp.float32)

    def u(kk, shape):
        return jax.random.uniform(kk, shape, jnp.float32, minval=-k, maxval=k)

    wir, wiz, win = (u(keys[1], (hidden, hidden)), u(keys[2], (hidden, hidden)),
                     u(keys[3], (hidden, hidden)))
    whr, whz, whn = (u(keys[4], (hidden, hidden)), u(keys[5], (hidden, hidden)),
                     u(keys[6], (hidden, hidden)))
    bir, biz, bin_ = u(keys[7], (1, hidden)), u(keys[8], (1, hidden)), u(keys[9], (1, hidden))
    bhr, bhz, bhn = u(keys[10], (1, hidden)), u(keys[11], (1, hidden)), u(keys[12], (1, hidden))
    gru_params = (wir, wiz, win, whr, whz, whn, bir, biz, bin_, bhr, bhz, bhn)
    return emb_table, gru_params


if __name__ == "__main__":
    T, H = 8, 32
    lexicon_size = 50                 # len(lexicon); embedding has lexicon_size + 1 rows
    V1 = lexicon_size + 1

    key = jax.random.PRNGKey(0)
    pkey, tkey_small, tkey_big = jax.random.split(key, 3)
    emb_table, gru_params = init_params(pkey, V1, H)

    # (B=2): module-sized check; (B=32): exercises the dual-chain recurrence path.
    # bf16 MXU operands vs f32 reference -> tolerance loosened per perf review.
    for B, tkey in ((2, tkey_small), (32, tkey_big)):
        tokens = jax.random.randint(tkey, (B, T), 0, V1, dtype=jnp.int32)
        h_kernel = jax.block_until_ready(
            text_encoder_forward(tokens, emb_table, gru_params))
        h_ref = jax.block_until_ready(
            reference_forward(tokens, emb_table, gru_params))
        assert h_kernel.shape == (B, H), h_kernel.shape
        max_err = float(jnp.max(jnp.abs(h_kernel - h_ref)))
        assert jnp.allclose(h_kernel, h_ref, rtol=5e-2, atol=5e-2), max_err

    print("KERNEL_OK")
</pallas_src>

<mosaic_0001>
module attributes {stable_mosaic.version = 11 : i64} {
  func.func @gru_text_encoder_kernel(%arg0: i32, %arg1: memref<1x64x1xi32, #tpu.memory_space<vmem>>, %arg2: memref<128x128xbf16, #tpu.memory_space<vmem>>, %arg3: memref<128x384xbf16, #tpu.memory_space<vmem>>, %arg4: memref<128x384xbf16, #tpu.memory_space<vmem>>, %arg5: memref<1x384xf32, #tpu.memory_space<vmem>>, %arg6: memref<1x384xf32, #tpu.memory_space<vmem>>, %arg7: memref<8x128xf32, #tpu.memory_space<vmem>>, %arg8: memref<8x8x384xf32, #tpu.memory_space<vmem>>) attributes {dimension_semantics = [#tpu.dimension_semantics<parallel>], iteration_bounds = array<i64: 1>, scalar_prefetch = 0 : i64, scratch_operands = 1 : i64, tpu.core_type = #tpu.core_type<tc>, window_params = [{transform_indices = @transform_0, window_bounds = array<i64: 1, 64, 1>}, {pipeline_mode = #tpu.pipeline_mode<synchronous>, transform_indices = @transform_1, window_bounds = array<i64: 128, 128>}, {pipeline_mode = #tpu.pipeline_mode<synchronous>, transform_indices = @transform_2, window_bounds = array<i64: 128, 384>}, {pipeline_mode = #tpu.pipeline_mode<synchronous>, transform_indices = @transform_3, window_bounds = array<i64: 128, 384>}, {pipeline_mode = #tpu.pipeline_mode<synchronous>, transform_indices = @transform_4, window_bounds = array<i64: 1, 384>}, {pipeline_mode = #tpu.pipeline_mode<synchronous>, transform_indices = @transform_5, window_bounds = array<i64: 1, 384>}, {transform_indices = @transform_6, window_bounds = array<i64: 8, 128>}]} {
    %c0 = arith.constant 0 : index
    %c0_0 = arith.constant 0 : index
    %c0_1 = arith.constant 0 : index
    %0 = vector.load %arg1[%c0, %c0_0, %c0_1] : memref<1x64x1xi32, #tpu.memory_space<vmem>>, vector<1x64x1xi32>
    %1 = vector.shape_cast %0 : vector<1x64x1xi32> to vector<64x1xi32>
    %2 = tpu.iota {dimensions = array<i32: 1>} : vector<64x128xi32>
    %3 = vector.broadcast %1 : vector<64x1xi32> to vector<64x128xi32>
    %4 = arith.cmpi eq, %2, %3 : vector<64x128xi32>
    %5 = arith.extui %4 : vector<64x128xi1> to vector<64x128xi32>
    %6 = arith.sitofp %5 : vector<64x128xi32> to vector<64x128xf32>
    %7 = arith.truncf %6 : vector<64x128xf32> to vector<64x128xbf16>
    %c0_2 = arith.constant 0 : index
    %c0_3 = arith.constant 0 : index
    %8 = vector.load %arg2[%c0_2, %c0_3] : memref<128x128xbf16, #tpu.memory_space<vmem>>, vector<128x128xbf16>
    %cst = arith.constant dense<0.000000e+00> : vector<64x128xf32>
    %9 = tpu.matmul %7, %8, %cst {dimension_numbers = #tpu.dot_dimension_numbers<[1], [0], [0], [1], [0, 0, 1, 1], [], []>} : vector<64x128xbf16>, vector<128x128xbf16>, vector<64x128xf32> -> vector<64x128xf32>
    %10 = arith.truncf %9 : vector<64x128xf32> to vector<64x128xbf16>
    %c0_4 = arith.constant 0 : index
    %c0_5 = arith.constant 0 : index
    %11 = vector.load %arg3[%c0_4, %c0_5] : memref<128x384xbf16, #tpu.memory_space<vmem>>, vector<128x384xbf16>
    %cst_6 = arith.constant dense<0.000000e+00> : vector<64x384xf32>
    %12 = tpu.matmul %10, %11, %cst_6 {dimension_numbers = #tpu.dot_dimension_numbers<[1], [0], [0], [1], [0, 0, 1, 1], [], []>} : vector<64x128xbf16>, vector<128x384xbf16>, vector<64x384xf32> -> vector<64x384xf32>
    %c0_7 = arith.constant 0 : index
    %c0_8 = arith.constant 0 : index
    %13 = vector.load %arg5[%c0_7, %c0_8] : memref<1x384xf32, #tpu.memory_space<vmem>>, vector<1x384xf32>
    %14 = vector.broadcast %13 : vector<1x384xf32> to vector<64x384xf32>
    %15 = arith.addf %12, %14 : vector<64x384xf32>
    %16 = vector.shape_cast %15 : vector<64x384xf32> to vector<8x8x384xf32>
    %c0_9 = arith.constant 0 : index
    %c0_10 = arith.constant 0 : index
    %c0_11 = arith.constant 0 : index
    %17 = vector.load %arg8[%c0_9, %c0_10, %c0_11] : memref<8x8x384xf32, #tpu.memory_space<vmem>>, vector<8x8x384xf32>
    tpu.vector_store %arg8[%c0_9, %c0_10, %c0_11], %16 {strides = array<i32>} : memref<8x8x384xf32, #tpu.memory_space<vmem>>, vector<8x8x384xf32>,
    %c0_12 = arith.constant 0 : index
    %c0_13 = arith.constant 0 : index
    %18 = vector.load %arg4[%c0_12, %c0_13] : memref<128x384xbf16, #tpu.memory_space<vmem>>, vector<128x384xbf16>
    %c0_14 = arith.constant 0 : index
    %c0_15 = arith.constant 0 : index
    %19 = vector.load %arg6[%c0_14, %c0_15] : memref<1x384xf32, #tpu.memory_space<vmem>>, vector<1x384xf32>
    %20 = vector.shape_cast %19 : vector<1x384xf32> to vector<1x384xf32>
    %21 = vector.broadcast %20 : vector<1x384xf32> to vector<8x384xf32>
    %cst_16 = arith.constant 0.000000e+00 : f32
    %22 = vector.broadcast %cst_16 : f32 to vector<8x128xf32>
    %c0_17 = arith.constant 0 : index
    %c0_18 = arith.constant 0 : index
    %c0_19 = arith.constant 0 : index
    %23 = vector.load %arg8[%c0_17, %c0_18, %c0_19] : memref<8x8x384xf32, #tpu.memory_space<vmem>>, vector<1x8x384xf32>
    %24 = vector.shape_cast %23 : vector<1x8x384xf32> to vector<8x384xf32>
    %25 = arith.truncf %22 : vector<8x128xf32> to vector<8x128xbf16>
    %cst_20 = arith.constant dense<0.000000e+00> : vector<8x384xf32>
    %26 = tpu.matmul %25, %18, %cst_20 {dimension_numbers = #tpu.dot_dimension_numbers<[1], [0], [0], [1], [0, 0, 1, 1], [], []>} : vector<8x128xbf16>, vector<128x384xbf16>, vector<8x384xf32> -> vector<8x384xf32>
    %27 = arith.addf %26, %21 : vector<8x384xf32>
    %28 = vector.extract_strided_slice %24 {offsets = [0, 0], sizes = [8, 256], strides = [1, 1]} : vector<8x384xf32> to vector<8x256xf32>
    %29 = vector.extract_strided_slice %27 {offsets = [0, 0], sizes = [8, 256], strides = [1, 1]} : vector<8x384xf32> to vector<8x256xf32>
    %30 = arith.addf %28, %29 : vector<8x256xf32>
    %31 = arith.negf %30 : vector<8x256xf32>
    %32 = math.exp %31 : vector<8x256xf32>
    %cst_21 = arith.constant 1.000000e+00 : f32
    %33 = vector.broadcast %cst_21 : f32 to vector<8x256xf32>
    %34 = arith.addf %33, %32 : vector<8x256xf32>
    %35 = arith.divf %33, %34 : vector<8x256xf32>
    %36 = vector.extract_strided_slice %35 {offsets = [0, 128], sizes = [8, 128], strides = [1, 1]} : vector<8x256xf32> to vector<8x128xf32>
    %37 = vector.extract_strided_slice %24 {offsets = [0, 256], sizes = [8, 128], strides = [1, 1]} : vector<8x384xf32> to vector<8x128xf32>
    %38 = vector.extract_strided_slice %35 {offsets = [0, 0], sizes = [8, 128], strides = [1, 1]} : vector<8x256xf32> to vector<8x128xf32>
    %39 = vector.extract_strided_slice %27 {offsets = [0, 256], sizes = [8, 128], strides = [1, 1]} : vector<8x384xf32> to vector<8x128xf32>
    %40 = arith.mulf %38, %39 : vector<8x128xf32>
    %41 = arith.addf %37, %40 : vector<8x128xf32>
    %42 = math.tanh %41 : vector<8x128xf32>
    %43 = arith.subf %22, %42 : vector<8x128xf32>
    %44 = arith.mulf %36, %43 : vector<8x128xf32>
    %45 = arith.addf %42, %44 : vector<8x128xf32>
    %c1 = arith.constant 1 : index
    %c0_22 = arith.constant 0 : index
    %c0_23 = arith.constant 0 : index
    %46 = vector.load %arg8[%c1, %c0_22, %c0_23] : memref<8x8x384xf32, #tpu.memory_space<vmem>>, vector<1x8x384xf32>
    %47 = vector.shape_cast %46 : vector<1x8x384xf32> to vector<8x384xf32>
    %48 = arith.truncf %45 : vector<8x128xf32> to vector<8x128xbf16>
    %cst_24 = arith.constant dense<0.000000e+00> : vector<8x384xf32>
    %49 = tpu.matmul %48, %18, %cst_24 {dimension_numbers = #tpu.dot_dimension_numbers<[1], [0], [0], [1], [0, 0, 1, 1], [], []>} : vector<8x128xbf16>, vector<128x384xbf16>, vector<8x384xf32> -> vector<8x384xf32>
    %50 = arith.addf %49, %21 : vector<8x384xf32>
    %51 = vector.extract_strided_slice %47 {offsets = [0, 0], sizes = [8, 256], strides = [1, 1]} : vector<8x384xf32> to vector<8x256xf32>
    %52 = vector.extract_strided_slice %50 {offsets = [0, 0], sizes = [8, 256], strides = [1, 1]} : vector<8x384xf32> to vector<8x256xf32>
    %53 = arith.addf %51, %52 : vector<8x256xf32>
    %54 = arith.negf %53 : vector<8x256xf32>
    %55 = math.exp %54 : vector<8x256xf32>
    %cst_25 = arith.constant 1.000000e+00 : f32
    %56 = vector.broadcast %cst_25 : f32 to vector<8x256xf32>
    %57 = arith.addf %56, %55 : vector<8x256xf32>
    %58 = arith.divf %56, %57 : vector<8x256xf32>
    %59 = vector.extract_strided_slice %58 {offsets = [0, 128], sizes = [8, 128], strides = [1, 1]} : vector<8x256xf32> to vector<8x128xf32>
    %60 = vector.extract_strided_slice %47 {offsets = [0, 256], sizes = [8, 128], strides = [1, 1]} : vector<8x384xf32> to vector<8x128xf32>
    %61 = vector.extract_strided_slice %58 {offsets = [0, 0], sizes = [8, 128], strides = [1, 1]} : vector<8x256xf32> to vector<8x128xf32>
    %62 = vector.extract_strided_slice %50 {offsets = [0, 256], sizes = [8, 128], strides = [1, 1]} : vector<8x384xf32> to vector<8x128xf32>
    %63 = arith.mulf %61, %62 : vector<8x128xf32>
    %64 = arith.addf %60, %63 : vector<8x128xf32>
    %65 = math.tanh %64 : vector<8x128xf32>
    %66 = arith.subf %45, %65 : vector<8x128xf32>
    %67 = arith.mulf %59, %66 : vector<8x128xf32>
    %68 = arith.addf %65, %67 : vector<8x128xf32>
    %c2 = arith.constant 2 : index
    %c0_26 = arith.constant 0 : index
    %c0_27 = arith.constant 0 : index
    %69 = vector.load %arg8[%c2, %c0_26, %c0_27] : memref<8x8x384xf32, #tpu.memory_space<vmem>>, vector<1x8x384xf32>
    %70 = vector.shape_cast %69 : vector<1x8x384xf32> to vector<8x384xf32>
    %71 = arith.truncf %68 : vector<8x128xf32> to vector<8x128xbf16>
    %cst_28 = arith.constant dense<0.000000e+00> : vector<8x384xf32>
    %72 = tpu.matmul %71, %18, %cst_28 {dimension_numbers = #tpu.dot_dimension_numbers<[1], [0], [0], [1], [0, 0, 1, 1], [], []>} : vector<8x128xbf16>, vector<128x384xbf16>, vector<8x384xf32> -> vector<8x384xf32>
    %73 = arith.addf %72, %21 : vector<8x384xf32>
    %74 = vector.extract_strided_slice %70 {offsets = [0, 0], sizes = [8, 256], strides = [1, 1]} : vector<8x384xf32> to vector<8x256xf32>
    %75 = vector.extract_strided_slice %73 {offsets = [0, 0], sizes = [8, 256], strides = [1, 1]} : vector<8x384xf32> to vector<8x256xf32>
    %76 = arith.addf %74, %75 : vector<8x256xf32>
    %77 = arith.negf %76 : vector<8x256xf32>
    %78 = math.exp %77 : vector<8x256xf32>
    %cst_29 = arith.constant 1.000000e+00 : f32
    %79 = vector.broadcast %cst_29 : f32 to vector<8x256xf32>
    %80 = arith.addf %79, %78 : vector<8x256xf32>
    %81 = arith.divf %79, %80 : vector<8x256xf32>
    %82 = vector.extract_strided_slice %81 {offsets = [0, 128], sizes = [8, 128], strides = [1, 1]} : vector<8x256xf32> to vector<8x128xf32>
    %83 = vector.extract_strided_slice %70 {offsets = [0, 256], sizes = [8, 128], strides = [1, 1]} : vector<8x384xf32> to vector<8x128xf32>
    %84 = vector.extract_strided_slice %81 {offsets = [0, 0], sizes = [8, 128], strides = [1, 1]} : vector<8x256xf32> to vector<8x128xf32>
    %85 = vector.extract_strided_slice %73 {offsets = [0, 256], sizes = [8, 128], strides = [1, 1]} : vector<8x384xf32> to vector<8x128xf32>
    %86 = arith.mulf %84, %85 : vector<8x128xf32>
    %87 = arith.addf %83, %86 : vector<8x128xf32>
    %88 = math.tanh %87 : vector<8x128xf32>
    %89 = arith.subf %68, %88 : vector<8x128xf32>
    %90 = arith.mulf %82, %89 : vector<8x128xf32>
    %91 = arith.addf %88, %90 : vector<8x128xf32>
    %c3 = arith.constant 3 : index
    %c0_30 = arith.constant 0 : index
    %c0_31 = arith.constant 0 : index
    %92 = vector.load %arg8[%c3, %c0_30, %c0_31] : memref<8x8x384xf32, #tpu.memory_space<vmem>>, vector<1x8x384xf32>
    %93 = vector.shape_cast %92 : vector<1x8x384xf32> to vector<8x384xf32>
    %94 = arith.truncf %91 : vector<8x128xf32> to vector<8x128xbf16>
    %cst_32 = arith.constant dense<0.000000e+00> : vector<8x384xf32>
    %95 = tpu.matmul %94, %18, %cst_32 {dimension_numbers = #tpu.dot_dimension_numbers<[1], [0], [0], [1], [0, 0, 1, 1], [], []>} : vector<8x128xbf16>, vector<128x384xbf16>, vector<8x384xf32> -> vector<8x384xf32>
    %96 = arith.addf %95, %21 : vector<8x384xf32>
    %97 = vector.extract_strided_slice %93 {offsets = [0, 0], sizes = [8, 256], strides = [1, 1]} : vector<8x384xf32> to vector<8x256xf32>
    %98 = vector.extract_strided_slice %96 {offsets = [0, 0], sizes = [8, 256], strides = [1, 1]} : vector<8x384xf32> to vector<8x256xf32>
    %99 = arith.addf %97, %98 : vector<8x256xf32>
    %100 = arith.negf %99 : vector<8x256xf32>
    %101 = math.exp %100 : vector<8x256xf32>
    %cst_33 = arith.constant 1.000000e+00 : f32
    %102 = vector.broadcast %cst_33 : f32 to vector<8x256xf32>
    %103 = arith.addf %102, %101 : vector<8x256xf32>
    %104 = arith.divf %102, %103 : vector<8x256xf32>
    %105 = vector.extract_strided_slice %104 {offsets = [0, 128], sizes = [8, 128], strides = [1, 1]} : vector<8x256xf32> to vector<8x128xf32>
    %106 = vector.extract_strided_slice %93 {offsets = [0, 256], sizes = [8, 128], strides = [1, 1]} : vector<8x384xf32> to vector<8x128xf32>
    %107 = vector.extract_strided_slice %104 {offsets = [0, 0], sizes = [8, 128], strides = [1, 1]} : vector<8x256xf32> to vector<8x128xf32>
    %108 = vector.extract_strided_slice %96 {offsets = [0, 256], sizes = [8, 128], strides = [1, 1]} : vector<8x384xf32> to vector<8x128xf32>
    %109 = arith.mulf %107, %108 : vector<8x128xf32>
    %110 = arith.addf %106, %109 : vector<8x128xf32>
    %111 = math.tanh %110 : vector<8x128xf32>
    %112 = arith.subf %91, %111 : vector<8x128xf32>
    %113 = arith.mulf %105, %112 : vector<8x128xf32>
    %114 = arith.addf %111, %113 : vector<8x128xf32>
    %c4 = arith.constant 4 : index
    %c0_34 = arith.constant 0 : index
    %c0_35 = arith.constant 0 : index
    %115 = vector.load %arg8[%c4, %c0_34, %c0_35] : memref<8x8x384xf32, #tpu.memory_space<vmem>>, vector<1x8x384xf32>
    %116 = vector.shape_cast %115 : vector<1x8x384xf32> to vector<8x384xf32>
    %117 = arith.truncf %114 : vector<8x128xf32> to vector<8x128xbf16>
    %cst_36 = arith.constant dense<0.000000e+00> : vector<8x384xf32>
    %118 = tpu.matmul %117, %18, %cst_36 {dimension_numbers = #tpu.dot_dimension_numbers<[1], [0], [0], [1], [0, 0, 1, 1], [], []>} : vector<8x128xbf16>, vector<128x384xbf16>, vector<8x384xf32> -> vector<8x384xf32>
    %119 = arith.addf %118, %21 : vector<8x384xf32>
    %120 = vector.extract_strided_slice %116 {offsets = [0, 0], sizes = [8, 256], strides = [1, 1]} : vector<8x384xf32> to vector<8x256xf32>
    %121 = vector.extract_strided_slice %119 {offsets = [0, 0], sizes = [8, 256], strides = [1, 1]} : vector<8x384xf32> to vector<8x256xf32>
    %122 = arith.addf %120, %121 : vector<8x256xf32>
    %123 = arith.negf %122 : vector<8x256xf32>
    %124 = math.exp %123 : vector<8x256xf32>
    %cst_37 = arith.constant 1.000000e+00 : f32
    %125 = vector.broadcast %cst_37 : f32 to vector<8x256xf32>
    %126 = arith.addf %125, %124 : vector<8x256xf32>
    %127 = arith.divf %125, %126 : vector<8x256xf32>
    %128 = vector.extract_strided_slice %127 {offsets = [0, 128], sizes = [8, 128], strides = [1, 1]} : vector<8x256xf32> to vector<8x128xf32>
    %129 = vector.extract_strided_slice %116 {offsets = [0, 256], sizes = [8, 128], strides = [1, 1]} : vector<8x384xf32> to vector<8x128xf32>
    %130 = vector.extract_strided_slice %127 {offsets = [0, 0], sizes = [8, 128], strides = [1, 1]} : vector<8x256xf32> to vector<8x128xf32>
    %131 = vector.extract_strided_slice %119 {offsets = [0, 256], sizes = [8, 128], strides = [1, 1]} : vector<8x384xf32> to vector<8x128xf32>
    %132 = arith.mulf %130, %131 : vector<8x128xf32>
    %133 = arith.addf %129, %132 : vector<8x128xf32>
    %134 = math.tanh %133 : vector<8x128xf32>
    %135 = arith.subf %114, %134 : vector<8x128xf32>
    %136 = arith.mulf %128, %135 : vector<8x128xf32>
    %137 = arith.addf %134, %136 : vector<8x128xf32>
    %c5 = arith.constant 5 : index
    %c0_38 = arith.constant 0 : index
    %c0_39 = arith.constant 0 : index
    %138 = vector.load %arg8[%c5, %c0_38, %c0_39] : memref<8x8x384xf32, #tpu.memory_space<vmem>>, vector<1x8x384xf32>
    %139 = vector.shape_cast %138 : vector<1x8x384xf32> to vector<8x384xf32>
    %140 = arith.truncf %137 : vector<8x128xf32> to vector<8x128xbf16>
    %cst_40 = arith.constant dense<0.000000e+00> : vector<8x384xf32>
    %141 = tpu.matmul %140, %18, %cst_40 {dimension_numbers = #tpu.dot_dimension_numbers<[1], [0], [0], [1], [0, 0, 1, 1], [], []>} : vector<8x128xbf16>, vector<128x384xbf16>, vector<8x384xf32> -> vector<8x384xf32>
    %142 = arith.addf %141, %21 : vector<8x384xf32>
    %143 = vector.extract_strided_slice %139 {offsets = [0, 0], sizes = [8, 256], strides = [1, 1]} : vector<8x384xf32> to vector<8x256xf32>
    %144 = vector.extract_strided_slice %142 {offsets = [0, 0], sizes = [8, 256], strides = [1, 1]} : vector<8x384xf32> to vector<8x256xf32>
    %145 = arith.addf %143, %144 : vector<8x256xf32>
    %146 = arith.negf %145 : vector<8x256xf32>
    %147 = math.exp %146 : vector<8x256xf32>
    %cst_41 = arith.constant 1.000000e+00 : f32
    %148 = vector.broadcast %cst_41 : f32 to vector<8x256xf32>
    %149 = arith.addf %148, %147 : vector<8x256xf32>
    %150 = arith.divf %148, %149 : vector<8x256xf32>
    %151 = vector.extract_strided_slice %150 {offsets = [0, 128], sizes = [8, 128], strides = [1, 1]} : vector<8x256xf32> to vector<8x128xf32>
    %152 = vector.extract_strided_slice %139 {offsets = [0, 256], sizes = [8, 128], strides = [1, 1]} : vector<8x384xf32> to vector<8x128xf32>
    %153 = vector.extract_strided_slice %150 {offsets = [0, 0], sizes = [8, 128], strides = [1, 1]} : vector<8x256xf32> to vector<8x128xf32>
    %154 = vector.extract_strided_slice %142 {offsets = [0, 256], sizes = [8, 128], strides = [1, 1]} : vector<8x384xf32> to vector<8x128xf32>
    %155 = arith.mulf %153, %154 : vector<8x128xf32>
    %156 = arith.addf %152, %155 : vector<8x128xf32>
    %157 = math.tanh %156 : vector<8x128xf32>
    %158 = arith.subf %137, %157 : vector<8x128xf32>
    %159 = arith.mulf %151, %158 : vector<8x128xf32>
    %160 = arith.addf %157, %159 : vector<8x128xf32>
    %c6 = arith.constant 6 : index
    %c0_42 = arith.constant 0 : index
    %c0_43 = arith.constant 0 : index
    %161 = vector.load %arg8[%c6, %c0_42, %c0_43] : memref<8x8x384xf32, #tpu.memory_space<vmem>>, vector<1x8x384xf32>
    %162 = vector.shape_cast %161 : vector<1x8x384xf32> to vector<8x384xf32>
    %163 = arith.truncf %160 : vector<8x128xf32> to vector<8x128xbf16>
    %cst_44 = arith.constant dense<0.000000e+00> : vector<8x384xf32>
    %164 = tpu.matmul %163, %18, %cst_44 {dimension_numbers = #tpu.dot_dimension_numbers<[1], [0], [0], [1], [0, 0, 1, 1], [], []>} : vector<8x128xbf16>, vector<128x384xbf16>, vector<8x384xf32> -> vector<8x384xf32>
    %165 = arith.addf %164, %21 : vector<8x384xf32>
    %166 = vector.extract_strided_slice %162 {offsets = [0, 0], sizes = [8, 256], strides = [1, 1]} : vector<8x384xf32> to vector<8x256xf32>
    %167 = vector.extract_strided_slice %165 {offsets = [0, 0], sizes = [8, 256], strides = [1, 1]} : vector<8x384xf32> to vector<8x256xf32>
    %168 = arith.addf %166, %167 : vector<8x256xf32>
    %169 = arith.negf %168 : vector<8x256xf32>
    %170 = math.exp %169 : vector<8x256xf32>
    %cst_45 = arith.constant 1.000000e+00 : f32
    %171 = vector.broadcast %cst_45 : f32 to vector<8x256xf32>
    %172 = arith.addf %171, %170 : vector<8x256xf32>
    %173 = arith.divf %171, %172 : vector<8x256xf32>
    %174 = vector.extract_strided_slice %173 {offsets = [0, 128], sizes = [8, 128], strides = [1, 1]} : vector<8x256xf32> to vector<8x128xf32>
    %175 = vector.extract_strided_slice %162 {offsets = [0, 256], sizes = [8, 128], strides = [1, 1]} : vector<8x384xf32> to vector<8x128xf32>
    %176 = vector.extract_strided_slice %173 {offsets = [0, 0], sizes = [8, 128], strides = [1, 1]} : vector<8x256xf32> to vector<8x128xf32>
    %177 = vector.extract_strided_slice %165 {offsets = [0, 256], sizes = [8, 128], strides = [1, 1]} : vector<8x384xf32> to vector<8x128xf32>
    %178 = arith.mulf %176, %177 : vector<8x128xf32>
    %179 = arith.addf %175, %178 : vector<8x128xf32>
    %180 = math.tanh %179 : vector<8x128xf32>
    %181 = arith.subf %160, %180 : vector<8x128xf32>
    %182 = arith.mulf %174, %181 : vector<8x128xf32>
    %183 = arith.addf %180, %182 : vector<8x128xf32>
    %c7 = arith.constant 7 : index
    %c0_46 = arith.constant 0 : index
    %c0_47 = arith.constant 0 : index
    %184 = vector.load %arg8[%c7, %c0_46, %c0_47] : memref<8x8x384xf32, #tpu.memory_space<vmem>>, vector<1x8x384xf32>
    %185 = vector.shape_cast %184 : vector<1x8x384xf32> to vector<8x384xf32>
    %186 = arith.truncf %183 : vector<8x128xf32> to vector<8x128xbf16>
    %cst_48 = arith.constant dense<0.000000e+00> : vector<8x384xf32>
    %187 = tpu.matmul %186, %18, %cst_48 {dimension_numbers = #tpu.dot_dimension_numbers<[1], [0], [0], [1], [0, 0, 1, 1], [], []>} : vector<8x128xbf16>, vector<128x384xbf16>, vector<8x384xf32> -> vector<8x384xf32>
    %188 = arith.addf %187, %21 : vector<8x384xf32>
    %189 = vector.extract_strided_slice %185 {offsets = [0, 0], sizes = [8, 256], strides = [1, 1]} : vector<8x384xf32> to vector<8x256xf32>
    %190 = vector.extract_strided_slice %188 {offsets = [0, 0], sizes = [8, 256], strides = [1, 1]} : vector<8x384xf32> to vector<8x256xf32>
    %191 = arith.addf %189, %190 : vector<8x256xf32>
    %192 = arith.negf %191 : vector<8x256xf32>
    %193 = math.exp %192 : vector<8x256xf32>
    %cst_49 = arith.constant 1.000000e+00 : f32
    %194 = vector.broadcast %cst_49 : f32 to vector<8x256xf32>
    %195 = arith.addf %194, %193 : vector<8x256xf32>
    %196 = arith.divf %194, %195 : vector<8x256xf32>
    %197 = vector.extract_strided_slice %196 {offsets = [0, 128], sizes = [8, 128], strides = [1, 1]} : vector<8x256xf32> to vector<8x128xf32>
    %198 = vector.extract_strided_slice %185 {offsets = [0, 256], sizes = [8, 128], strides = [1, 1]} : vector<8x384xf32> to vector<8x128xf32>
    %199 = vector.extract_strided_slice %196 {offsets = [0, 0], sizes = [8, 128], strides = [1, 1]} : vector<8x256xf32> to vector<8x128xf32>
    %200 = vector.extract_strided_slice %188 {offsets = [0, 256], sizes = [8, 128], strides = [1, 1]} : vector<8x384xf32> to vector<8x128xf32>
    %201 = arith.mulf %199, %200 : vector<8x128xf32>
    %202 = arith.addf %198, %201 : vector<8x128xf32>
    %203 = math.tanh %202 : vector<8x128xf32>
    %204 = arith.subf %183, %203 : vector<8x128xf32>
    %205 = arith.mulf %197, %204 : vector<8x128xf32>
    %206 = arith.addf %203, %205 : vector<8x128xf32>
    %c0_50 = arith.constant 0 : index
    %c0_51 = arith.constant 0 : index
    %207 = vector.load %arg7[%c0_50, %c0_51] : memref<8x128xf32, #tpu.memory_space<vmem>>, vector<8x128xf32>
    tpu.vector_store %arg7[%c0_50, %c0_51], %206 {strides = array<i32>} : memref<8x128xf32, #tpu.memory_space<vmem>>, vector<8x128xf32>,
    return
  }
  func.func @transform_0(%arg0: i32) -> (i32, i32, i32) {
    %c0_i32 = arith.constant 0 : i32
    %c0_i32_0 = arith.constant 0 : i32
    %c0_i32_1 = arith.constant 0 : i32
    return %arg0, %c0_i32, %c0_i32_0 : i32, i32, i32
  }
  func.func @transform_1(%arg0: i32) -> (i32, i32) {
    %c0_i32 = arith.constant 0 : i32
    %c0_i32_0 = arith.constant 0 : i32
    %c0_i32_1 = arith.constant 0 : i32
    return %c0_i32, %c0_i32_0 : i32, i32
  }
  func.func @transform_2(%arg0: i32) -> (i32, i32) {
    %c0_i32 = arith.constant 0 : i32
    %c0_i32_0 = arith.constant 0 : i32
    %c0_i32_1 = arith.constant 0 : i32
    return %c0_i32, %c0_i32_0 : i32, i32
  }
  func.func @transform_3(%arg0: i32) -> (i32, i32) {
    %c0_i32 = arith.constant 0 : i32
    %c0_i32_0 = arith.constant 0 : i32
    %c0_i32_1 = arith.constant 0 : i32
    return %c0_i32, %c0_i32_0 : i32, i32
  }
  func.func @transform_4(%arg0: i32) -> (i32, i32) {
    %c0_i32 = arith.constant 0 : i32
    %c0_i32_0 = arith.constant 0 : i32
    %c0_i32_1 = arith.constant 0 : i32
    return %c0_i32, %c0_i32_0 : i32, i32
  }
  func.func @transform_5(%arg0: i32) -> (i32, i32) {
    %c0_i32 = arith.constant 0 : i32
    %c0_i32_0 = arith.constant 0 : i32
    %c0_i32_1 = arith.constant 0 : i32
    return %c0_i32, %c0_i32_0 : i32, i32
  }
  func.func @transform_6(%arg0: i32) -> (i32, i32) {
    %c0_i32 = arith.constant 0 : i32
    %c0_i32_0 = arith.constant 0 : i32
    return %arg0, %c0_i32 : i32, i32
  }
}

</mosaic_0001>

<bundles_post_ra>
// kernel: tpu_custom_call.1
= control target key start
LH: loop header
LB: loop body
LE: loop exit
PB: predicated region body
PF: predicated region fallthrough
CT: control target
= control target key end

     0   :  { %11 = vsyncpa [#allocation4], 0  ;;  %s2861_s0 = inlined_call_operand.vmem [shape: s32[1,64,1], index: 0, kind: input, shape index: {}]   ;;  %s2862_s1 = inlined_call_operand.vmem [shape: bf16[128,128], index: 1, kind: input, shape index: {}]   ;;  %s2863_s2 = inlined_call_operand.hbm [shape: bf16[128,384], index: 2, kind: input, shape index: {}]   ;;  %s2864_s3 = inlined_call_operand.hbm [shape: bf16[128,384], index: 3, kind: input, shape index: {}]   ;;  %s2865_s4 = inlined_call_operand.vmem [shape: f32[1,384], index: 4, kind: input, shape index: {}]   ;;  %s2866_s5 = inlined_call_operand.vmem [shape: f32[1,384], index: 5, kind: input, shape index: {}]   ;;  %s2867_s6 = inlined_call_operand.hbm [shape: f32[8,128], index: 6, kind: output, shape index: {}]  }
   0x1   :  { %12 = vsyncpa [#allocation7], 0 }
   0x2   :  { %13 = vsyncpa [#allocation5], 0  ;;  %s2278_s21 = smov [#allocation3]   ;;  %s2206_s25 = scalar_lea.hbm %s2863_s2, 3072 }
   0x3   :  { %s23_s22 = sshll.u32 %s2278_s21, 4  ;;  %p2207_p0 = scmp.ne.s32.totalorder %s2863_s2, %s2206_s25  ;;  %s24_s22 = int_to_ptr.vmem [resolvable:$true] %s23_s22 }
   0x4   :  { %p2210_p1 = scmp.lt.u32.totalorder %s2206_s25, %s2863_s2 }
   0x6   :  { %p2212_p2 = pnand %p2210_p1, %p2207_p0 }
   0x8   :  { %2215 = shalt.err (!%p2212_p2)
}
   0x9   :  { %s2216_s30 = scalar_lea.vmem %s24_s22, 3072  ;;  %p2221_p4 = scmp.lt.s32.totalorder %s24_s22, %s24_s22 }
   0xa   :  { %p2217_p3 = scmp.ne.s32.totalorder %s24_s22, %s2216_s30  ;;  %p2222_p5 = scmp.lt.s32.totalorder %s2216_s30, %s2216_s30 }
   0xc   :  { %p2223_p6 = por %p2222_p5, %p2221_p4 }
   0xe   :  { %p2224_p7 = pnand %p2223_p6, %p2217_p3 }
  0x10   :  { %2227 = shalt.err (!%p2224_p7)
}
  0x11   :  { %s2279_s7 = smov 192   ;;  %s2280_s8 = smov 12  }
  0x12   :  { %29 = dma.hbm_to_vmem [thread:$0]  %s2863_s2, 3072, %s24_s22, [#allocation4], %s2279_s7, %s2279_s7, %s2280_s8  }
  0x13   :  { %s2281_s11 = smov [#allocation6]   ;;  %s2228_s15 = scalar_lea.hbm %s2864_s3, 3072 }
  0x14   :  { %s35_s12 = sshll.u32 %s2281_s11, 4  ;;  %p2229_p8 = scmp.ne.s32.totalorder %s2864_s3, %s2228_s15  ;;  %s36_s12 = int_to_ptr.vmem [resolvable:$true] %s35_s12 }
  0x15   :  { %p2232_p9 = scmp.lt.u32.totalorder %s2228_s15, %s2864_s3 }
  0x17   :  { %p2234_p10 = pnand %p2232_p9, %p2229_p8 }
  0x19   :  { %2237 = shalt.err (!%p2234_p10)
}
  0x1a   :  { %s2238_s20 = scalar_lea.vmem %s36_s12, 3072  ;;  %p2243_p12 = scmp.lt.s32.totalorder %s36_s12, %s36_s12 }
  0x1b   :  { %p2239_p11 = scmp.ne.s32.totalorder %s36_s12, %s2238_s20  ;;  %p2244_p13 = scmp.lt.s32.totalorder %s2238_s20, %s2238_s20 }
  0x1d   :  { %p2245_p0 = por %p2244_p13, %p2243_p12 }
  0x1f   :  { %p2246_p1 = pnand %p2245_p0, %p2239_p11 }
  0x21   :  { %2249 = shalt.err (!%p2246_p1)
}
  0x22   :  { %41 = dma.hbm_to_vmem [thread:$0]  %s2864_s3, 3072, %s36_s12, [#allocation7], %s2279_s7, %s2279_s7, %s2280_s8  }
  0x23   :  { %2272 = dma.done.wait [#allocation4], 3072  }
  0x24   :  { %2273 = vsyncadd [#allocation4], 4294964224 }
  0x25   :  { %2274 = dma.done.wait [#allocation7], 3072  }
  0x26   :  { %2275 = vsyncadd [#allocation7], 4294964224  ;;  %v2868_v0 = vmov 0   ;;  %v55_v1 = vld [vmem:[%s2861_s0 + $0x10] sm:$0xff]  ;;  %v53_v2 = vld [vmem:[%s2861_s0] sm:$0xff]  ;;  %v61_v32 = vlaneseq  ;;  %v2870_v53 = vmov 0.0  }
  0x27   :  { %2029 = vset.pattern.permute.xlu1 %v2868_v0  ;;  %2028 = vset.pattern.permute.xlu0 %v2868_v0  ;;  %v56_v3 = vld [vmem:[%s2861_s0 + $0x18] sm:$0xff]  ;;  %v54_v4 = vld [vmem:[%s2861_s0 + $0x8] sm:$0xff]  ;;  %v2030_v5 = vld [vmem:[%s2862_s1] sm:$0xff]   ;;  %v2283_v39 = vmov 1.0|1.0   ;;  %vm2285_vm12 = vmmov 0  }
  0x28   :  { %457 = vmatprep.mubr.bf16.mxu1 %v2868_v0  ;;  %70 = vperm.xlu1 %2029, %v55_v1   ;;  %v2031_v6 = vld [vmem:[%s2862_s1 + $0x8] sm:$0xff]   ;;  %v57_v8 = vld [vmem:[%s2861_s0 + $0x20] sm:$0xff]  ;;  %v60_v9 = vld [vmem:[%s2861_s0 + $0x38] sm:$0xff]  ;;  %v62_v35 = vand.u32 127, %v61_v32 }
  0x29   :  { %64 = vperm.xlu0 %2028, %v53_v2   ;;  %v58_v7 = vld [vmem:[%s2861_s0 + $0x28] sm:$0xff]  ;;  %1811 = vmatprep.subr.bf16.mxu0 %v2030_v5  ;;  %v2032_v10 = vld [vmem:[%s2862_s1 + $0x10] sm:$0xff]   ;;  %v2033_v12 = vld [vmem:[%s2862_s1 + $0x18] sm:$0xff]  }
  0x2a   :  { %1812 = vmatpush3.bf16.msra.mxu0 %v2030_v5  ;;  %v59_v11 = vld [vmem:[%s2861_s0 + $0x30] sm:$0xff]  ;;  %v2034_v13 = vld [vmem:[%s2862_s1 + $0x20] sm:$0xff]   ;;  %v2038_v14 = vld [vmem:[#allocation3 + $0x4] ss:$12 sps:$4 sm:$0xff]  }
  0x2b   :  { %1813 = vmatprep.subr.bf16.mxu0 %v2031_v6  ;;  %v2040_v15 = vld [vmem:[#allocation3] ss:$12 sps:$4 sm:$0xff]   ;;  %v2042_v16 = vld [vmem:[#allocation3 + $0x1c] ss:$12 sps:$4 sm:$0xff]   ;;  %425 = vmatprep.subr.bf16.mxu1 %v2038_v14  ;;  %v2044_v18 = vld [vmem:[#allocation3 + $0x18] ss:$12 sps:$4 sm:$0xff]  }
  0x2c   :  { %73 = vperm.xlu1 %2029, %v56_v3   ;;  %v2035_v17 = vld [vmem:[%s2862_s1 + $0x28] sm:$0xff]   ;;  %426 = vmatpush1.bf16.msra.mxu1 %v2040_v15  ;;  %v2036_v20 = vld [vmem:[%s2862_s1 + $0x30] sm:$0xff]   ;;  %v2048_v21 = vld [vmem:[#allocation3 + $0x30] ss:$12 sps:$4 sm:$0xff]  }
  0x2d   :  { %67 = vperm.xlu0 %2028, %v54_v4   ;;  %v2046_v19 = vld [vmem:[#allocation3 + $0x34] ss:$12 sps:$4 sm:$0xff]   ;;  %427 = vmatprep.subr.bf16.mxu1 %v2042_v16  ;;  %v2050_v22 = vld [vmem:[#allocation3 + $0x4c] ss:$12 sps:$4 sm:$0xff]   ;;  %v2054_v25 = vld [vmem:[#allocation3 + $0x64] ss:$12 sps:$4 sm:$0xff]  }
  0x2e   :  { %1814 = vmatpush3.bf16.msra.mxu0 %v2031_v6  ;;  %v2037_v23 = vld [vmem:[%s2862_s1 + $0x38] sm:$0xff]   ;;  %v2056_v27 = vld [vmem:[#allocation3 + $0x60] ss:$12 sps:$4 sm:$0xff]   ;;  %v2058_v28 = vld [vmem:[#allocation3 + $0x7c] ss:$12 sps:$4 sm:$0xff]  }
  0x2f   :  { %1815 = vmatprep.subr.bf16.mxu0 %v2032_v10  ;;  %v2052_v24 = vld [vmem:[#allocation3 + $0x48] ss:$12 sps:$4 sm:$0xff]   ;;  %v2060_v29 = vld [vmem:[#allocation3 + $0x78] ss:$12 sps:$4 sm:$0xff]   ;;  %v2064_v31 = vld [vmem:[#allocation3 + $0x90] ss:$12 sps:$4 sm:$0xff]  }
  0x30   :  { %79 = vperm.xlu1 %2029, %v58_v7   ;;  %428 = vmatpush1.bf16.msra.mxu1 %v2044_v18  ;;  %v2041_v26 = vld [vmem:[#allocation3 + $0x8] ss:$12 sps:$4 sm:$0xff]   ;;  %v2045_v38 = vld [vmem:[#allocation3 + $0x20] ss:$12 sps:$4 sm:$0xff]   ;;  %v2049_v42 = vld [vmem:[#allocation3 + $0x38] ss:$12 sps:$4 sm:$0xff]  }
  0x31   :  { %76 = vperm.xlu0 %2028, %v57_v8   ;;  %429 = vmatprep.subr.bf16.mxu1 %v2046_v19  ;;  %v2062_v30 = vld [vmem:[#allocation3 + $0x94] ss:$12 sps:$4 sm:$0xff]   ;;  %v2053_v45 = vld [vmem:[#allocation3 + $0x50] ss:$12 sps:$4 sm:$0xff]   ;;  %v2065_v48 = vld [vmem:[#allocation3 + $0x98] ss:$12 sps:$4 sm:$0xff]  }
  0x32   :  { %1816 = vmatpush3.bf16.msra.mxu0 %v2032_v10  ;;  %v2057_v46 = vld [vmem:[#allocation3 + $0x68] ss:$12 sps:$4 sm:$0xff]   ;;  %v2061_v47 = vld [vmem:[#allocation3 + $0x80] ss:$12 sps:$4 sm:$0xff]   ;;  %v2069_v51 = vld [vmem:[#allocation3 + $0xb0] ss:$12 sps:$4 sm:$0xff]  }
  0x33   :  { %1817 = vmatprep.subr.bf16.mxu0 %v2033_v12  ;;  %v2066_v49 = vld [vmem:[#allocation3 + $0xac] ss:$12 sps:$4 sm:$0xff]   ;;  %v2068_v50 = vld [vmem:[#allocation3 + $0xa8] ss:$12 sps:$4 sm:$0xff]   ;;  %v2398_v52 = vld [vmem:[#allocation6 + $0x4] ss:$12 sps:$4 sm:$0xff]  }
  0x34   :  { %85 = vperm.xlu1 %2029, %v60_v9   ;;  %430 = vmatpush1.bf16.msra.mxu1 %v2048_v21  ;;  %v2402_v59 = vld [vmem:[#allocation6] ss:$12 sps:$4 sm:$0xff]   ;;  %v2404_v61 = vld [vmem:[#allocation6 + $0x1c] ss:$12 sps:$4 sm:$0xff]   ;;  %v2409_v63 = vld [vmem:[#allocation6 + $0x18] ss:$12 sps:$4 sm:$0xff]  }
  0x35   :  { %82 = vperm.xlu0 %2028, %v59_v11   ;;  %431 = vmatprep.subr.bf16.mxu1 %v2050_v22  ;;  %v2406_v62 = vld [vmem:[#allocation6 + $0x8] ss:$12 sps:$4 sm:$0xff]   ;;  %v2416_v4 = vld [vmem:[#allocation6 + $0x20] ss:$12 sps:$4 sm:$0xff]   ;;  %v2420_v8 = vld [vmem:[#allocation6 + $0x30] ss:$12 sps:$4 sm:$0xff]  }
  0x36   :  { %1818 = vmatpush3.bf16.msra.mxu0 %v2033_v12  ;;  %v2413_v2 = vld [vmem:[#allocation6 + $0x34] ss:$12 sps:$4 sm:$0xff]   ;;  %v2423_v10 = vld [vmem:[#allocation6 + $0x4c] ss:$12 sps:$4 sm:$0xff]   ;;  %v2439_v14 = vld [vmem:[#allocation6 + $0x50] ss:$12 sps:$4 sm:$0xff]  }
  0x37   :  { %1819 = vmatprep.subr.bf16.mxu0 %v2034_v13  ;;  %v2426_v11 = vld [vmem:[#allocation6 + $0x38] ss:$12 sps:$4 sm:$0xff]   ;;  %v2429_v12 = vld [vmem:[#allocation6 + $0x48] ss:$12 sps:$4 sm:$0xff]   ;;  %v2442_v15 = vld [vmem:[#allocation6 + $0x60] ss:$12 sps:$4 sm:$0xff]  }
  0x38   :  { %432 = vmatpush1.bf16.msra.mxu1 %v2052_v24  ;;  %v2446_v16 = vld [vmem:[#allocation6 + $0x7c] ss:$12 sps:$4 sm:$0xff]   ;;  %v2452_v18 = vld [vmem:[#allocation6 + $0x78] ss:$12 sps:$4 sm:$0xff]   ;;  %v2456_v19 = vld [vmem:[#allocation6 + $0x94] ss:$12 sps:$4 sm:$0xff]  }
  0x39   :  { %433 = vmatprep.subr.bf16.mxu1 %v2054_v25  ;;  %v2463_v21 = vld [vmem:[#allocation6 + $0x90] ss:$12 sps:$4 sm:$0xff]   ;;  %v2467_v22 = vld [vmem:[#allocation6 + $0xac] ss:$12 sps:$4 sm:$0xff]   ;;  %v2473_v24 = vld [vmem:[#allocation6 + $0xa8] ss:$12 sps:$4 sm:$0xff]  }
  0x3a   :  { %1820 = vmatpush3.bf16.msra.mxu0 %v2034_v13  ;;  %v2433_v13 = vld [vmem:[#allocation6 + $0x64] ss:$12 sps:$4 sm:$0xff]  }
  0x3b   :  { %1821 = vmatprep.subr.bf16.mxu0 %v2035_v17  ;;  %v2479_v25 = vld [vmem:[#allocation6 + $0xb0] ss:$12 sps:$4 sm:$0xff]  }
  0x3c   :  { %434 = vmatpush1.bf16.msra.mxu1 %v2056_v27 }
  0x3d   :  { %435 = vmatprep.subr.bf16.mxu1 %v2058_v28  ;;  %v280_v28 = vld [vmem:[%s2865_s4] sm:$0x7] }
  0x3e   :  { %1822 = vmatpush3.bf16.msra.mxu0 %v2035_v17  ;;  %v2449_v17 = vld [vmem:[#allocation6 + $0x68] ss:$12 sps:$4 sm:$0xff]  }
  0x3f   :  { %1823 = vmatprep.subr.bf16.mxu0 %v2036_v20 }
  0x40   :  { %436 = vmatpush1.bf16.msra.mxu1 %v2060_v29 }
  0x41   :  { %437 = vmatprep.subr.bf16.mxu1 %v2062_v30 }
  0x42   :  { %1824 = vmatpush3.bf16.msra.mxu0 %v2036_v20  ;;  %v2460_v20 = vld [vmem:[#allocation6 + $0x80] ss:$12 sps:$4 sm:$0xff]  }
  0x43   :  { %1825 = vmatprep.subr.bf16.mxu0 %v2037_v23 }
  0x44   :  { %438 = vmatpush1.bf16.msra.mxu1 %v2064_v31 }
  0x45   :  { %439 = vmatprep.subr.bf16.mxu1 %v2066_v49 }
  0x46   :  { %1826 = vmatpush3.bf16.msra.mxu0 %v2037_v23  ;;  %v2470_v23 = vld [vmem:[#allocation6 + $0x98] ss:$12 sps:$4 sm:$0xff]  }
  0x47   :  { %1835 = vmatprep.subr.bf16.mxu0 %v2041_v26 }
  0x48   :  { %440 = vmatpush1.bf16.msra.mxu1 %v2068_v50 }
  0x49   :  { %767 = vmatprep.subr.bf16.mxu1 %v2398_v52 }
  0xa7   :  { %v71_v33 = vpop.permute.xlu1 %70 }
  0xa8   :  { %v65_v34 = vpop.permute.xlu0 %64  ;;  %vm89_vm0 = vcmp.eq.s32.totalorder %v62_v35, %v71_v33 }
  0xa9   :  { %vm87_vm3 = vcmp.eq.s32.totalorder %v62_v35, %v65_v34 }
  0xab   :  { %v74_v36 = vpop.permute.xlu1 %73 }
  0xac   :  { %v68_v37 = vpop.permute.xlu0 %67  ;;  %vm90_vm1 = vcmp.eq.s32.totalorder %v62_v35, %v74_v36 }
  0xad   :  { %vm88_vm2 = vcmp.eq.s32.totalorder %v62_v35, %v68_v37  ;;  %vm1645_vm4 = vmpackc.low %vm90_vm1, %vm89_vm0 }
  0xae   :  { %vm1643_vm5 = vmpackc.low %vm88_vm2, %vm87_vm3 }
  0xaf   :  { %1827 = vmatprep.mubr.msk.bf16.mxu0 %vm1643_vm5, %v2283_v39  ;;  %v80_v40 = vpop.permute.xlu1 %79 }
  0xb0   :  { %v77_v41 = vpop.permute.xlu0 %76  ;;  %vm92_vm6 = vcmp.eq.s32.totalorder %v62_v35, %v80_v40  ;;  %1828 = vmatmul.mubr.msk.bf16.vlgmr.msra.gmra.mrb[0].mxu0 %vm1645_vm4, %v2283_v39 }
  0xb1   :  { %vm91_vm7 = vcmp.eq.s32.totalorder %v62_v35, %v77_v41  ;;  %1836 = vmatpush3.bf16.msra.mxu0 %v2041_v26  ;;  %v2524_v26 = vshrl.u32 %v61_v32, 7 }
  0xb2   :  { %vm1647_vm8 = vmpackc.low %vm92_vm6, %vm91_vm7  ;;  %1837 = vmatprep.subr.bf16.mxu0 %v2045_v38 }
  0xb3   :  { %1831 = vmatprep.mubr.msk.bf16.mxu0 %vm1647_vm8, %v2283_v39  ;;  %v86_v43 = vpop.permute.xlu1 %85  ;;  %v284_v27 = vsub.s32 0, %v2524_v26  ;;  %v288_v29 = vsub.s32 1, %v2524_v26  ;;  %v2872_v30 = vsub.s32 2, %v2524_v26 }
  0xb4   :  { %v83_v44 = vpop.permute.xlu0 %82  ;;  %vm94_vm9 = vcmp.eq.s32.totalorder %v62_v35, %v86_v43 }
  0xb5   :  { %vm93_vm10 = vcmp.eq.s32.totalorder %v62_v35, %v83_v44  ;;  %1838 = vmatpush3.bf16.msra.mxu0 %v2045_v38  ;;  %v285_v31 = vrot.slane %v280_v28, %v284_v27  ;;  %v289_v33 = vrot.slane %v280_v28, %v288_v29  ;;  %v293_v34 = vrot.slane %v280_v28, %v2872_v30 }
  0xb6   :  { %vm1649_vm11 = vmpackc.low %vm94_vm9, %vm93_vm10  ;;  %1839 = vmatprep.subr.bf16.mxu0 %v2049_v42 }
  0xb8   :  { %1832 = vmatmul.mubr.msk.bf16.gmra.mrb[4].mxu0 %vm1649_vm11, %v2283_v39 }
  0xb9   :  { %1840 = vmatpush3.bf16.msra.mxu0 %v2049_v42 }
  0xba   :  { %1841 = vmatprep.subr.bf16.mxu0 %v2053_v45 }
  0xbd   :  { %1842 = vmatpush3.bf16.msra.mxu0 %v2053_v45 }
  0xbe   :  { %1843 = vmatprep.subr.bf16.mxu0 %v2057_v46 }
  0xc1   :  { %1844 = vmatpush3.bf16.msra.mxu0 %v2057_v46 }
  0xc2   :  { %1845 = vmatprep.subr.bf16.mxu0 %v2061_v47 }
  0xc5   :  { %1846 = vmatpush3.bf16.msra.mxu0 %v2061_v47 }
  0xc6   :  { %1847 = vmatprep.subr.bf16.mxu0 %v2065_v48 }
  0xc9   :  { %1848 = vmatpush3.bf16.msra.mxu0 %v2065_v48 }
  0xca   :  { %1849 = vmatprep.subr.bf16.mxu0 %v2069_v51 }
  0xcd   :  { %1850 = vmatpush3.bf16.msra.mxu0 %v2069_v51 }
  0xce   :  { %1859 = vmatprep.subr.bf16.mxu0 %v2870_v53 }
 0x183   :  { %v1829_v54 = vpop.f32.mrb[0].mxu0 }
 0x184   :  { %v213_v55 = vpop.f32.mrb[1].mxu0 }
 0x185   :  { %v1830_v56 = vpop.f32.mrb[2].mxu0 }
 0x186   :  { %v245_v57 = vpack.c.bf16 %v1830_v56, %v1829_v54  ;;  %v216_v58 = vpop.f32.mrb[3].mxu0 }
 0x187   :  { %v244_v60 = vpack.c.bf16 %v216_v58, %v213_v55 }
 0x189   :  { %458 = vmatmul.mubr.bf16.vlgmr.msra.gmra.mrb[0].mxu1 %v244_v60  ;;  %1851 = vmatprep.mubr.bf16.mxu0 %v244_v60 }
 0x18a   :  { %768 = vmatpush1.bf16.msra.mxu1 %v2402_v59  ;;  %1852 = vmatmul.mubr.bf16.vlgmr.msra.gmra.mrb[8].mxu0 %v245_v57 }
 0x18b   :  { %v1833_v1 = vpop.f32.mrb[4].mxu0  ;;  %769 = vmatprep.subr.bf16.mxu1 %v2404_v61  ;;  %467 = vmatprep.mubr.bf16.mxu1 %v2868_v0 }
 0x18c   :  { %v229_v3 = vpop.f32.mrb[5].mxu0  ;;  %1860 = vmatpush3.bf16.msra.mxu0 %v2406_v62 }
 0x18d   :  { %v1834_v5 = vpop.f32.mrb[6].mxu0  ;;  %1861 = vmatprep.subr.bf16.mxu0 %v2870_v53 }
 0x18e   :  { %v247_v6 = vpack.c.bf16 %v1834_v5, %v1833_v1  ;;  %770 = vmatpush1.bf16.msra.mxu1 %v2409_v63  ;;  %v232_v7 = vpop.f32.mrb[7].mxu0 }
 0x18f   :  { %v246_v9 = vpack.c.bf16 %v232_v7, %v229_v3  ;;  %771 = vmatprep.subr.bf16.mxu1 %v2413_v2 }
 0x190   :  { %1862 = vmatpush3.bf16.msra.mxu0 %v2416_v4 }
 0x191   :  { %468 = vmatmul.mubr.bf16.gmra.mrb[4].mxu1 %v245_v57  ;;  %1855 = vmatprep.mubr.bf16.mxu0 %v246_v9 }
 0x192   :  { %772 = vmatpush1.bf16.msra.mxu1 %v2420_v8  ;;  %1856 = vmatmul.mubr.bf16.gmra.mrb[12].mxu0 %v247_v6 }
 0x193   :  { %773 = vmatprep.subr.bf16.mxu1 %v2423_v10  ;;  %477 = vmatprep.mubr.bf16.mxu1 %v2868_v0 }
 0x194   :  { %1863 = vmatprep.subr.bf16.mxu0 %v2870_v53  ;;  %1875 = vmatprep.mubr.msk.bf16.mxu0 %vm2285_vm12, %v2870_v53 }
 0x195   :  { %1864 = vmatpush3.bf16.msra.mxu0 %v2426_v11 }
 0x196   :  { %774 = vmatpush1.bf16.msra.mxu1 %v2429_v12  ;;  %1865 = vmatprep.subr.bf16.mxu0 %v2870_v53 }
 0x197   :  { %775 = vmatprep.subr.bf16.mxu1 %v2433_v13 }
 0x199   :  { %478 = vmatmul.mubr.bf16.gmra.mrb[8].mxu1 %v246_v9  ;;  %1866 = vmatpush3.bf16.msra.mxu0 %v2439_v14 }
 0x19a   :  { %776 = vmatpush1.bf16.msra.mxu1 %v2442_v15  ;;  %487 = vmatprep.mubr.bf16.mxu1 %v2868_v0 }
 0x19b   :  { %777 = vmatprep.subr.bf16.mxu1 %v2446_v16  ;;  %1867 = vmatprep.subr.bf16.mxu0 %v2870_v53 }
 0x19d   :  { %1868 = vmatpush3.bf16.msra.mxu0 %v2449_v17 }
 0x19e   :  { %778 = vmatpush1.bf16.msra.mxu1 %v2452_v18  ;;  %1869 = vmatprep.subr.bf16.mxu0 %v2870_v53 }
 0x19f   :  { %779 = vmatprep.subr.bf16.mxu1 %v2456_v19 }
 0x1a1   :  { %488 = vmatmul.mubr.bf16.gmra.mrb[12].mxu1 %v247_v6  ;;  %1870 = vmatpush3.bf16.msra.mxu0 %v2460_v20 }
 0x1a2   :  { %780 = vmatpush1.bf16.msra.mxu1 %v2463_v21  ;;  %799 = vmatprep.mubr.bf16.mxu1 %v2868_v0 }
 0x1a3   :  { %781 = vmatprep.subr.bf16.mxu1 %v2467_v22  ;;  %1871 = vmatprep.subr.bf16.mxu0 %v2870_v53 }
 0x1a5   :  { %1872 = vmatpush3.bf16.msra.mxu0 %v2470_v23 }
 0x1a6   :  { %782 = vmatpush1.bf16.msra.mxu1 %v2473_v24  ;;  %1873 = vmatprep.subr.bf16.mxu0 %v2870_v53 }
 0x1a7   :  { %873 = vmatprep.subr.bf16.mxu1 %v2398_v52 }
 0x1a9   :  { %800 = vmatmul.mubr.bf16.vlgmr.msra.gmra.mrb[16].mxu1 %v2868_v0  ;;  %1874 = vmatpush3.bf16.msra.mxu0 %v2479_v25 }
 0x1aa   :  { %1879 = vmatprep.subr.bf16.mxu0 %v2870_v53  ;;  %874 = vmatpush1.bf16.msra.mxu1 %v2402_v59 }
 0x1ab   :  { %875 = vmatprep.subr.bf16.mxu1 %v2404_v61  ;;  %905 = vmatprep.mubr.bf16.mxu1 %v2868_v0 }
 0x1ac   :  { %1876 = vmatmul.mubr.bf16.vlgmr.msra.gmra.mrb[16].mxu0 %v2868_v0 }
 0x1ad   :  { %1880 = vmatpush3.bf16.msra.mxu0 %v2406_v62  ;;  %1895 = vmatprep.mubr.msk.bf16.mxu0 %vm2285_vm12, %v2870_v53 }
 0x1ae   :  { %1881 = vmatprep.subr.bf16.mxu0 %v2870_v53  ;;  %876 = vmatpush1.bf16.msra.mxu1 %v2409_v63 }
 0x1af   :  { %877 = vmatprep.subr.bf16.mxu1 %v2413_v2 }
 0x1b1   :  { %1882 = vmatpush3.bf16.msra.mxu0 %v2416_v4 }
 0x1b2   :  { %1883 = vmatprep.subr.bf16.mxu0 %v2870_v53  ;;  %878 = vmatpush1.bf16.msra.mxu1 %v2420_v8 }
 0x1b3   :  { %879 = vmatprep.subr.bf16.mxu1 %v2423_v10 }
 0x1b5   :  { %1884 = vmatpush3.bf16.msra.mxu0 %v2426_v11 }
 0x1b6   :  { %1885 = vmatprep.subr.bf16.mxu0 %v2870_v53  ;;  %880 = vmatpush1.bf16.msra.mxu1 %v2429_v12 }
 0x1b7   :  { %881 = vmatprep.subr.bf16.mxu1 %v2433_v13 }
 0x1b9   :  { %1886 = vmatpush3.bf16.msra.mxu0 %v2439_v14 }
 0x1ba   :  { %1887 = vmatprep.subr.bf16.mxu0 %v2870_v53  ;;  %882 = vmatpush1.bf16.msra.mxu1 %v2442_v15 }
 0x1bb   :  { %883 = vmatprep.subr.bf16.mxu1 %v2446_v16 }
 0x1bd   :  { %1888 = vmatpush3.bf16.msra.mxu0 %v2449_v17 }
 0x1be   :  { %1889 = vmatprep.subr.bf16.mxu0 %v2870_v53  ;;  %884 = vmatpush1.bf16.msra.mxu1 %v2452_v18 }
 0x1bf   :  { %885 = vmatprep.subr.bf16.mxu1 %v2456_v19 }
 0x1c1   :  { %1890 = vmatpush3.bf16.msra.mxu0 %v2460_v20 }
 0x1c2   :  { %1891 = vmatprep.subr.bf16.mxu0 %v2870_v53  ;;  %886 = vmatpush1.bf16.msra.mxu1 %v2463_v21 }
 0x1c3   :  { %887 = vmatprep.subr.bf16.mxu1 %v2467_v22 }
 0x1c5   :  { %1892 = vmatpush3.bf16.msra.mxu0 %v2470_v23 }
 0x1c6   :  { %1893 = vmatprep.subr.bf16.mxu0 %v2870_v53  ;;  %888 = vmatpush1.bf16.msra.mxu1 %v2473_v24 }
 0x1c7   :  { %979 = vmatprep.subr.bf16.mxu1 %v2398_v52 }
 0x1c9   :  { %1894 = vmatpush3.bf16.msra.mxu0 %v2479_v25 }
 0x1ca   :  { %1899 = vmatprep.subr.bf16.mxu0 %v2870_v53 }
 0x25c   :  { %v459_v35 = vpop.f32.mrb[0].mxu1 }
 0x25d   :  { %v460_v36 = vadd.f32 %v459_v35, %v285_v31  ;;  %v461_v37 = vpop.f32.mrb[1].mxu1  ;;  %v1853_v32 = vpop.f32.mrb[8].mxu0 }
 0x25e   :  { %v462_v38 = vadd.f32 %v461_v37, %v289_v33  ;;  %v2534_v39 = vadd.f32 %v1853_v32, %v293_v34  ;;  %v463_v40 = vpop.f32.mrb[2].mxu1  ;;  %v532_v41 = vpop.f32.mrb[9].mxu0 }
 0x25f   :  { %v2536_v42 = vadd.f32 %v463_v40, %v285_v31  ;;  %v2538_v43 = vadd.f32 %v532_v41, %v293_v34  ;;  %v465_v44 = vpop.f32.mrb[3].mxu1  ;;  %v1854_v45 = vpop.f32.mrb[10].mxu0 }
 0x260   :  { %v2540_v46 = vadd.f32 %v465_v44, %v289_v33  ;;  %v2542_v47 = vadd.f32 %v1854_v45, %v293_v34  ;;  %v535_v48 = vpop.f32.mrb[11].mxu0 }
 0x261   :  { %v2544_v49 = vadd.f32 %v535_v48, %v293_v34 }
 0x264   :  { %v469_v50 = vpop.f32.mrb[4].mxu1 }
 0x265   :  { %v2546_v51 = vadd.f32 %v469_v50, %v285_v31  ;;  %v471_v54 = vpop.f32.mrb[5].mxu1  ;;  %v1857_v55 = vpop.f32.mrb[12].mxu0 }
 0x266   :  { %v2548_v56 = vadd.f32 %v471_v54, %v289_v33  ;;  %v2550_v57 = vadd.f32 %v1857_v55, %v293_v34  ;;  %v473_v58 = vpop.f32.mrb[6].mxu1  ;;  %v548_v60 = vpop.f32.mrb[13].mxu0 }
 0x267   :  { %v2552_v1 = vadd.f32 %v473_v58, %v285_v31  ;;  %v2554_v3 = vadd.f32 %v548_v60, %v293_v34  ;;  %v475_v5 = vpop.f32.mrb[7].mxu1  ;;  %v1858_v6 = vpop.f32.mrb[14].mxu0 }
 0x268   :  { %2873 = vst [vmem:[#allocation12_spill] sm:$0xff] %v2550_v57  ;;  %v2556_v7 = vadd.f32 %v475_v5, %v289_v33  ;;  %v2558_v9 = vadd.f32 %v1858_v6, %v293_v34  ;;  %v551_v28 = vpop.f32.mrb[15].mxu0  ;;  %v619_v5 = vld [vmem:[%s2866_s5] sm:$0x7]  ;;  %s2286_s5 = smov [#allocation8]  }
 0x269   :  { %v2560_v35 = vadd.f32 %v551_v28, %v293_v34  ;;  %s1617_s28 = sshll.u32 %s2286_s5, 4  ;;  %s1618_s28 = int_to_ptr.vmem [resolvable:$true] %s1617_s28 }
 0x26a   :  { %2874 = vst [vmem:[#allocation13_spill] sm:$0xff] %v2558_v9  ;;  %s2250_s29 = scalar_lea.vmem %s1618_s28, 128  ;;  %p2255_p3 = scmp.lt.s32.totalorder %s1618_s28, %s1618_s28 }
 0x26b   :  { %p2251_p2 = scmp.ne.s32.totalorder %s1618_s28, %s2250_s29  ;;  %p2256_p4 = scmp.lt.s32.totalorder %s2250_s29, %s2250_s29 }
 0x26c   :  { %v479_v37 = vpop.f32.mrb[8].mxu1 }
 0x26d   :  { %v2562_v32 = vadd.f32 %v479_v37, %v285_v31  ;;  %v481_v40 = vpop.f32.mrb[9].mxu1  ;;  %p2257_p5 = por %p2256_p4, %p2255_p3 }
 0x26e   :  { %v2564_v41 = vadd.f32 %v481_v40, %v289_v33  ;;  %v483_v44 = vpop.f32.mrb[10].mxu1  ;;  %v2581_v40 = vrot.slane %v619_v5, %v284_v27 }
 0x26f   :  { %v2566_v45 = vadd.f32 %v483_v44, %v285_v31  ;;  %v485_v48 = vpop.f32.mrb[11].mxu1  ;;  %v2583_v44 = vrot.slane %v619_v5, %v288_v29  ;;  %p2258_p6 = pnand %p2257_p5, %p2251_p2 }
 0x270   :  { %v2568_v50 = vadd.f32 %v485_v48, %v289_v33 }
 0x274   :  { %v489_v54 = vpop.f32.mrb[12].mxu1 }
 0x275   :  { %v2570_v55 = vadd.f32 %v489_v54, %v285_v31  ;;  %v491_v58 = vpop.f32.mrb[13].mxu1 }
 0x276   :  { %v2572_v60 = vadd.f32 %v491_v58, %v289_v33  ;;  %v493_v34 = vpop.f32.mrb[14].mxu1 }
 0x277   :  { %v2577_v6 = vadd.f32 %v493_v34, %v285_v31  ;;  %v495_v28 = vpop.f32.mrb[15].mxu1 }
 0x278   :  { %2875 = vst [vmem:[#allocation14_spill] sm:$0xff] %v2572_v60  ;;  %v2579_v37 = vadd.f32 %v495_v28, %v289_v33 }
 0x279   :  { %2876 = vst [vmem:[#allocation15_spill] sm:$0xff] %v2577_v6 }
 0x27a   :  { %2877 = vst [vmem:[#allocation16_spill] sm:$0xff] %v2579_v37 }
 0x27c   :  { %v801_v48 = vpop.f32.mrb[16].mxu1 }
 0x27d   :  { %v802_v54 = vadd.f32 %v801_v48, %v2581_v40  ;;  %v803_v0 = vpop.f32.mrb[17].mxu1  ;;  %v2878_v48 = vsub.s32 2, %v2524_v26 }
 0x27e   :  { %v804_v58 = vadd.f32 %v803_v0, %v2583_v44  ;;  %v805_v53 = vpop.f32.mrb[18].mxu1 }
 0x27f   :  { %v848_v30 = vadd.f32 %v802_v54, %v460_v36  ;;  %v806_v9 = vpop.f32.mrb[19].mxu1  ;;  %v842_v57 = vpop.f32.mrb[16].mxu0  ;;  %v2589_v37 = vrot.slane %v619_v5, %v2878_v48 }
 0x280   :  { %v849_v60 = vadd.f32 %v804_v58, %v462_v38  ;;  %v1877_v31 = vpop.f32.mrb[17].mxu0 }
 0x281   :  { %v1699_v34 = vmul.f32 -1.442695, %v848_v30  ;;  %v845_v6 = vpop.f32.mrb[18].mxu0  ;;  %v843_v0 = vadd.f32 %v842_v57, %v2589_v37  ;;  %v2880_v57 = vmov 0  }
 0x282   :  { %v1878_v33 = vpop.f32.mrb[19].mxu0  ;;  %v1700_v27 = vmul.f32 -1.442695, %v849_v60 }
 0x283   :  { %2102 = vpow2.f32 %v1699_v34 }
 0x284   :  { %2104 = vpow2.f32 %v1700_v27 }
 0x28d   :  { %v2103_v28 = vpop.eup %2102 }
 0x28e   :  { %v856_v29 = vadd.f32 1.0, %v2103_v28  ;;  %v2105_v53 = vpop.eup %2104 }
 0x28f   :  { %v857_v38 = vadd.f32 1.0, %v2105_v53 }
 0x290   :  { %2106 = vrcp.f32 %v856_v29 }
 0x29a   :  { %v2107_v36 = vpop.eup %2106 }
 0x29b   :  { %v862_v9 = vmul.f32 %v2107_v36, %v843_v0 }
 0x29d   :  { %v863_v30 = vadd.f32 %v862_v9, %v2538_v43  ;;  %v2879_v43 = vmov 0.0  }
 0x29f   :  { %2108 = vtanh.f32 %v863_v30 }
 0x2a0   :  { %2110 = vrcp.f32 %v857_v38 }
 0x2a9   :  { %v2109_v6 = vpop.eup %2108 }
 0x2aa   :  { %v865_v60 = vsub.f32 0.0, %v2109_v6  ;;  %v2111_v54 = vpop.eup %2110 }
 0x2ac   :  { %v866_v58 = vmul.f32 %v2111_v54, %v865_v60 }
 0x2ae   :  { %v2593_v31 = vadd.f32 %v2109_v6, %v866_v58 }
 0x2b0   :  { %v872_v26 = vpack.c.bf16 %v2593_v31, %v2593_v31 }
 0x2b2   :  { %906 = vmatmul.mubr.bf16.vlgmr.msra.gmra.mrb[20].mxu1 %v872_v26  ;;  %1896 = vmatmul.mubr.bf16.vlgmr.msra.gmra.mrb[20].mxu0 %v872_v26 }
 0x2b3   :  { %980 = vmatpush1.bf16.msra.mxu1 %v2402_v59  ;;  %1900 = vmatpush3.bf16.msra.mxu0 %v2406_v62 }
 0x2b4   :  { %981 = vmatprep.subr.bf16.mxu1 %v2404_v61  ;;  %1901 = vmatprep.subr.bf16.mxu0 %v2879_v43 }
 0x2b5   :  { %1011 = vmatprep.mubr.bf16.mxu1 %v2880_v57  ;;  %1915 = vmatprep.mubr.msk.bf16.mxu0 %vm2285_vm12, %v2879_v43 }
 0x2b7   :  { %982 = vmatpush1.bf16.msra.mxu1 %v2409_v63  ;;  %1902 = vmatpush3.bf16.msra.mxu0 %v2416_v4 }
 0x2b8   :  { %983 = vmatprep.subr.bf16.mxu1 %v2413_v2  ;;  %1903 = vmatprep.subr.bf16.mxu0 %v2879_v43 }
 0x2bb   :  { %984 = vmatpush1.bf16.msra.mxu1 %v2420_v8  ;;  %1904 = vmatpush3.bf16.msra.mxu0 %v2426_v11 }
 0x2bc   :  { %985 = vmatprep.subr.bf16.mxu1 %v2423_v10  ;;  %1905 = vmatprep.subr.bf16.mxu0 %v2879_v43 }
 0x2bf   :  { %986 = vmatpush1.bf16.msra.mxu1 %v2429_v12  ;;  %1906 = vmatpush3.bf16.msra.mxu0 %v2439_v14 }
 0x2c0   :  { %987 = vmatprep.subr.bf16.mxu1 %v2433_v13  ;;  %1907 = vmatprep.subr.bf16.mxu0 %v2879_v43 }
 0x2c3   :  { %988 = vmatpush1.bf16.msra.mxu1 %v2442_v15  ;;  %1908 = vmatpush3.bf16.msra.mxu0 %v2449_v17 }
 0x2c4   :  { %989 = vmatprep.subr.bf16.mxu1 %v2446_v16  ;;  %1909 = vmatprep.subr.bf16.mxu0 %v2879_v43 }
 0x2c7   :  { %990 = vmatpush1.bf16.msra.mxu1 %v2452_v18  ;;  %1910 = vmatpush3.bf16.msra.mxu0 %v2460_v20 }
 0x2c8   :  { %991 = vmatprep.subr.bf16.mxu1 %v2456_v19  ;;  %1911 = vmatprep.subr.bf16.mxu0 %v2879_v43 }
 0x2cb   :  { %992 = vmatpush1.bf16.msra.mxu1 %v2463_v21  ;;  %1912 = vmatpush3.bf16.msra.mxu0 %v2470_v23 }
 0x2cc   :  { %993 = vmatprep.subr.bf16.mxu1 %v2467_v22  ;;  %1913 = vmatprep.subr.bf16.mxu0 %v2879_v43 }
 0x2cf   :  { %994 = vmatpush1.bf16.msra.mxu1 %v2473_v24  ;;  %1914 = vmatpush3.bf16.msra.mxu0 %v2479_v25 }
 0x2d0   :  { %1085 = vmatprep.subr.bf16.mxu1 %v2398_v52  ;;  %1919 = vmatprep.subr.bf16.mxu0 %v2879_v43 }
 0x385   :  { %v907_v5 = vpop.f32.mrb[20].mxu1  ;;  %v948_v34 = vpop.f32.mrb[20].mxu0 }
 0x386   :  { %v908_v33 = vadd.f32 %v907_v5, %v2581_v40  ;;  %v909_v27 = vpop.f32.mrb[21].mxu1  ;;  %v1897_v28 = vpop.f32.mrb[21].mxu0  ;;  %v949_v26 = vadd.f32 %v948_v34, %v2589_v37 }
 0x387   :  { %v910_v29 = vadd.f32 %v909_v27, %v2583_v44  ;;  %v911_v48 = vpop.f32.mrb[22].mxu1  ;;  %v951_v0 = vpop.f32.mrb[22].mxu0 }
 0x388   :  { %v954_v53 = vadd.f32 %v908_v33, %v2536_v42  ;;  %v912_v36 = vpop.f32.mrb[23].mxu1  ;;  %v1898_v9 = vpop.f32.mrb[23].mxu0 }
 0x389   :  { %v955_v38 = vadd.f32 %v910_v29, %v2540_v46 }
 0x38a   :  { %v1701_v30 = vmul.f32 -1.442695, %v954_v53 }
 0x38b   :  { %v1702_v6 = vmul.f32 -1.442695, %v955_v38 }
 0x38c   :  { %2112 = vpow2.f32 %v1701_v30 }
 0x38d   :  { %2114 = vpow2.f32 %v1702_v6 }
 0x396   :  { %v2113_v60 = vpop.eup %2112 }
 0x397   :  { %v962_v54 = vadd.f32 1.0, %v2113_v60  ;;  %v2115_v58 = vpop.eup %2114 }
 0x398   :  { %v963_v48 = vadd.f32 1.0, %v2115_v58 }
 0x399   :  { %2116 = vrcp.f32 %v962_v54 }
 0x3a3   :  { %v2117_v5 = vpop.eup %2116 }
 0x3a4   :  { %v968_v27 = vmul.f32 %v2117_v5, %v949_v26 }
 0x3a6   :  { %v969_v28 = vadd.f32 %v968_v27, %v2544_v49 }
 0x3a8   :  { %2118 = vtanh.f32 %v969_v28 }
 0x3a9   :  { %2120 = vrcp.f32 %v963_v48 }
 0x3b2   :  { %v2119_v42 = vpop.eup %2118 }
 0x3b3   :  { %v971_v46 = vsub.f32 %v2593_v31, %v2119_v42  ;;  %v2121_v33 = vpop.eup %2120 }
 0x3b5   :  { %v972_v29 = vmul.f32 %v2121_v33, %v971_v46 }
 0x3b7   :  { %v2639_v0 = vadd.f32 %v2119_v42, %v972_v29 }
 0x3b9   :  { %v978_v53 = vpack.c.bf16 %v2639_v0, %v2639_v0 }
 0x3bb   :  { %1012 = vmatmul.mubr.bf16.vlgmr.msra.gmra.mrb[24].mxu1 %v978_v53  ;;  %1916 = vmatmul.mubr.bf16.vlgmr.msra.gmra.mrb[24].mxu0 %v978_v53 }
 0x3bc   :  { %1086 = vmatpush1.bf16.msra.mxu1 %v2402_v59  ;;  %1920 = vmatpush3.bf16.msra.mxu0 %v2406_v62 }
 0x3bd   :  { %1087 = vmatprep.subr.bf16.mxu1 %v2404_v61  ;;  %1921 = vmatprep.subr.bf16.mxu0 %v2879_v43 }
 0x3be   :  { %1117 = vmatprep.mubr.bf16.mxu1 %v2880_v57  ;;  %1935 = vmatprep.mubr.msk.bf16.mxu0 %vm2285_vm12, %v2879_v43 }
 0x3c0   :  { %1088 = vmatpush1.bf16.msra.mxu1 %v2409_v63  ;;  %1922 = vmatpush3.bf16.msra.mxu0 %v2416_v4 }
 0x3c1   :  { %1089 = vmatprep.subr.bf16.mxu1 %v2413_v2  ;;  %1923 = vmatprep.subr.bf16.mxu0 %v2879_v43 }
 0x3c4   :  { %1090 = vmatpush1.bf16.msra.mxu1 %v2420_v8  ;;  %1924 = vmatpush3.bf16.msra.mxu0 %v2426_v11 }
 0x3c5   :  { %1091 = vmatprep.subr.bf16.mxu1 %v2423_v10  ;;  %1925 = vmatprep.subr.bf16.mxu0 %v2879_v43 }
 0x3c8   :  { %1092 = vmatpush1.bf16.msra.mxu1 %v2429_v12  ;;  %1926 = vmatpush3.bf16.msra.mxu0 %v2439_v14 }
 0x3c9   :  { %1093 = vmatprep.subr.bf16.mxu1 %v2433_v13  ;;  %1927 = vmatprep.subr.bf16.mxu0 %v2879_v43 }
 0x3cc   :  { %1094 = vmatpush1.bf16.msra.mxu1 %v2442_v15  ;;  %1928 = vmatpush3.bf16.msra.mxu0 %v2449_v17 }
 0x3cd   :  { %1095 = vmatprep.subr.bf16.mxu1 %v2446_v16  ;;  %1929 = vmatprep.subr.bf16.mxu0 %v2879_v43 }
 0x3d0   :  { %1096 = vmatpush1.bf16.msra.mxu1 %v2452_v18  ;;  %1930 = vmatpush3.bf16.msra.mxu0 %v2460_v20 }
 0x3d1   :  { %1097 = vmatprep.subr.bf16.mxu1 %v2456_v19  ;;  %1931 = vmatprep.subr.bf16.mxu0 %v2879_v43 }
 0x3d4   :  { %1098 = vmatpush1.bf16.msra.mxu1 %v2463_v21  ;;  %1932 = vmatpush3.bf16.msra.mxu0 %v2470_v23 }
 0x3d5   :  { %1099 = vmatprep.subr.bf16.mxu1 %v2467_v22  ;;  %1933 = vmatprep.subr.bf16.mxu0 %v2879_v43 }
 0x3d8   :  { %1100 = vmatpush1.bf16.msra.mxu1 %v2473_v24  ;;  %1934 = vmatpush3.bf16.msra.mxu0 %v2479_v25 }
 0x3d9   :  { %1191 = vmatprep.subr.bf16.mxu1 %v2398_v52  ;;  %1939 = vmatprep.subr.bf16.mxu0 %v2879_v43 }
 0x48e   :  { %v1013_v49 = vpop.f32.mrb[24].mxu1  ;;  %v1054_v31 = vpop.f32.mrb[24].mxu0 }
 0x48f   :  { %v1014_v34 = vadd.f32 %v1013_v49, %v2581_v40  ;;  %v1015_v36 = vpop.f32.mrb[25].mxu1  ;;  %v1917_v9 = vpop.f32.mrb[25].mxu0  ;;  %v1055_v46 = vadd.f32 %v1054_v31, %v2589_v37 }
 0x490   :  { %v1016_v38 = vadd.f32 %v1015_v36, %v2583_v44  ;;  %v1017_v30 = vpop.f32.mrb[26].mxu1  ;;  %v1057_v6 = vpop.f32.mrb[26].mxu0 }
 0x491   :  { %v1060_v60 = vadd.f32 %v1014_v34, %v2546_v51  ;;  %v1018_v54 = vpop.f32.mrb[27].mxu1  ;;  %v1918_v58 = vpop.f32.mrb[27].mxu0 }
 0x492   :  { %v1061_v26 = vadd.f32 %v1016_v38, %v2548_v56 }
 0x493   :  { %v1703_v5 = vmul.f32 -1.442695, %v1060_v60 }
 0x494   :  { %v1704_v27 = vmul.f32 -1.442695, %v1061_v26 }
 0x495   :  { %2122 = vpow2.f32 %v1703_v5 }
 0x496   :  { %2124 = vpow2.f32 %v1704_v27 }
 0x49f   :  { %v2123_v28 = vpop.eup %2122 }
 0x4a0   :  { %v1068_v48 = vadd.f32 1.0, %v2123_v28  ;;  %v2125_v42 = vpop.eup %2124 }
 0x4a1   :  { %v1069_v49 = vadd.f32 1.0, %v2125_v42 }
 0x4a2   :  { %2126 = vrcp.f32 %v1068_v48 }
 0x4ac   :  { %v2127_v33 = vpop.eup %2126 }
 0x4ad   :  { %v1074_v29 = vmul.f32 %v2127_v33, %v1055_v46 }
 0x4af   :  { %v1075_v53 = vadd.f32 %v1074_v29, %v2534_v39 }
 0x4b1   :  { %2128 = vtanh.f32 %v1075_v53 }
 0x4b2   :  { %2130 = vrcp.f32 %v1069_v49 }
 0x4bb   :  { %v2129_v51 = vpop.eup %2128 }
 0x4bc   :  { %v1077_v56 = vsub.f32 %v2639_v0, %v2129_v51  ;;  %v2131_v34 = vpop.eup %2130 }
 0x4be   :  { %v1078_v36 = vmul.f32 %v2131_v34, %v1077_v56 }
 0x4c0   :  { %v2685_v9 = vadd.f32 %v2129_v51, %v1078_v36 }
 0x4c2   :  { %v1084_v38 = vpack.c.bf16 %v2685_v9, %v2685_v9 }
 0x4c4   :  { %1118 = vmatmul.mubr.bf16.vlgmr.msra.gmra.mrb[28].mxu1 %v1084_v38  ;;  %1936 = vmatmul.mubr.bf16.vlgmr.msra.gmra.mrb[28].mxu0 %v1084_v38 }
 0x4c5   :  { %1192 = vmatpush1.bf16.msra.mxu1 %v2402_v59  ;;  %1940 = vmatpush3.bf16.msra.mxu0 %v2406_v62 }
 0x4c6   :  { %1193 = vmatprep.subr.bf16.mxu1 %v2404_v61  ;;  %1941 = vmatprep.subr.bf16.mxu0 %v2879_v43 }
 0x4c7   :  { %1223 = vmatprep.mubr.bf16.mxu1 %v2880_v57  ;;  %1955 = vmatprep.mubr.msk.bf16.mxu0 %vm2285_vm12, %v2879_v43 }
 0x4c9   :  { %1194 = vmatpush1.bf16.msra.mxu1 %v2409_v63  ;;  %1942 = vmatpush3.bf16.msra.mxu0 %v2416_v4 }
 0x4ca   :  { %1195 = vmatprep.subr.bf16.mxu1 %v2413_v2  ;;  %1943 = vmatprep.subr.bf16.mxu0 %v2879_v43 }
 0x4cd   :  { %1196 = vmatpush1.bf16.msra.mxu1 %v2420_v8  ;;  %1944 = vmatpush3.bf16.msra.mxu0 %v2426_v11 }
 0x4ce   :  { %1197 = vmatprep.subr.bf16.mxu1 %v2423_v10  ;;  %1945 = vmatprep.subr.bf16.mxu0 %v2879_v43 }
 0x4d1   :  { %1198 = vmatpush1.bf16.msra.mxu1 %v2429_v12  ;;  %1946 = vmatpush3.bf16.msra.mxu0 %v2439_v14 }
 0x4d2   :  { %1199 = vmatprep.subr.bf16.mxu1 %v2433_v13  ;;  %1947 = vmatprep.subr.bf16.mxu0 %v2879_v43 }
 0x4d5   :  { %1200 = vmatpush1.bf16.msra.mxu1 %v2442_v15  ;;  %1948 = vmatpush3.bf16.msra.mxu0 %v2449_v17 }
 0x4d6   :  { %1201 = vmatprep.subr.bf16.mxu1 %v2446_v16  ;;  %1949 = vmatprep.subr.bf16.mxu0 %v2879_v43 }
 0x4d9   :  { %1202 = vmatpush1.bf16.msra.mxu1 %v2452_v18  ;;  %1950 = vmatpush3.bf16.msra.mxu0 %v2460_v20 }
 0x4da   :  { %1203 = vmatprep.subr.bf16.mxu1 %v2456_v19  ;;  %1951 = vmatprep.subr.bf16.mxu0 %v2879_v43 }
 0x4dd   :  { %1204 = vmatpush1.bf16.msra.mxu1 %v2463_v21  ;;  %1952 = vmatpush3.bf16.msra.mxu0 %v2470_v23 }
 0x4de   :  { %1205 = vmatprep.subr.bf16.mxu1 %v2467_v22  ;;  %1953 = vmatprep.subr.bf16.mxu0 %v2879_v43 }
 0x4e1   :  { %1206 = vmatpush1.bf16.msra.mxu1 %v2473_v24  ;;  %1954 = vmatpush3.bf16.msra.mxu0 %v2479_v25 }
 0x4e2   :  { %1297 = vmatprep.subr.bf16.mxu1 %v2398_v52  ;;  %1959 = vmatprep.subr.bf16.mxu0 %v2879_v43 }
 0x597   :  { %v1119_v39 = vpop.f32.mrb[28].mxu1  ;;  %v1160_v0 = vpop.f32.mrb[28].mxu0 }
 0x598   :  { %v1120_v31 = vadd.f32 %v1119_v39, %v2581_v40  ;;  %v1121_v30 = vpop.f32.mrb[29].mxu1  ;;  %v1937_v6 = vpop.f32.mrb[29].mxu0  ;;  %v1161_v53 = vadd.f32 %v1160_v0, %v2589_v37 }
 0x599   :  { %v1122_v60 = vadd.f32 %v1121_v30, %v2583_v44  ;;  %v1123_v54 = vpop.f32.mrb[30].mxu1  ;;  %v1163_v58 = vpop.f32.mrb[30].mxu0 }
 0x59a   :  { %v1166_v26 = vadd.f32 %v1120_v31, %v2552_v1  ;;  %v1124_v5 = vpop.f32.mrb[31].mxu1  ;;  %v1938_v27 = vpop.f32.mrb[31].mxu0 }
 0x59b   :  { %v1167_v28 = vadd.f32 %v1122_v60, %v2556_v7 }
 0x59c   :  { %v1705_v48 = vmul.f32 -1.442695, %v1166_v26 }
 0x59d   :  { %v1706_v42 = vmul.f32 -1.442695, %v1167_v28 }
 0x59e   :  { %2132 = vpow2.f32 %v1705_v48 }
 0x59f   :  { %2134 = vpow2.f32 %v1706_v42 }
 0x5a8   :  { %v2133_v46 = vpop.eup %2132 }
 0x5a9   :  { %v1174_v33 = vadd.f32 1.0, %v2133_v46  ;;  %v2135_v29 = vpop.eup %2134 }
 0x5aa   :  { %v1175_v34 = vadd.f32 1.0, %v2135_v29 }
 0x5ab   :  { %2136 = vrcp.f32 %v1174_v33 }
 0x5b5   :  { %v2137_v49 = vpop.eup %2136 }
 0x5b6   :  { %v1180_v51 = vmul.f32 %v2137_v49, %v1161_v53 }
 0x5b8   :  { %v1181_v56 = vadd.f32 %v1180_v51, %v2542_v47 }
 0x5ba   :  { %2138 = vtanh.f32 %v1181_v56 }
 0x5bb   :  { %2140 = vrcp.f32 %v1175_v34 }
 0x5c4   :  { %v2139_v1 = vpop.eup %2138 }
 0x5c5   :  { %v1183_v7 = vsub.f32 %v2685_v9, %v2139_v1  ;;  %v2141_v36 = vpop.eup %2140 }
 0x5c7   :  { %v1184_v38 = vmul.f32 %v2141_v36, %v1183_v7 }
 0x5c9   :  { %v2731_v39 = vadd.f32 %v2139_v1, %v1184_v38 }
 0x5cb   :  { %v1190_v31 = vpack.c.bf16 %v2731_v39, %v2731_v39 }
 0x5cd   :  { %1224 = vmatmul.mubr.bf16.vlgmr.msra.gmra.mrb[32].mxu1 %v1190_v31  ;;  %1956 = vmatmul.mubr.bf16.vlgmr.msra.gmra.mrb[32].mxu0 %v1190_v31 }
 0x5ce   :  { %1298 = vmatpush1.bf16.msra.mxu1 %v2402_v59  ;;  %1960 = vmatpush3.bf16.msra.mxu0 %v2406_v62 }
 0x5cf   :  { %1299 = vmatprep.subr.bf16.mxu1 %v2404_v61  ;;  %1961 = vmatprep.subr.bf16.mxu0 %v2879_v43 }
 0x5d0   :  { %1329 = vmatprep.mubr.bf16.mxu1 %v2880_v57  ;;  %1975 = vmatprep.mubr.msk.bf16.mxu0 %vm2285_vm12, %v2879_v43 }
 0x5d2   :  { %1300 = vmatpush1.bf16.msra.mxu1 %v2409_v63  ;;  %1962 = vmatpush3.bf16.msra.mxu0 %v2416_v4 }
 0x5d3   :  { %1301 = vmatprep.subr.bf16.mxu1 %v2413_v2  ;;  %1963 = vmatprep.subr.bf16.mxu0 %v2879_v43 }
 0x5d6   :  { %1302 = vmatpush1.bf16.msra.mxu1 %v2420_v8  ;;  %1964 = vmatpush3.bf16.msra.mxu0 %v2426_v11 }
 0x5d7   :  { %1303 = vmatprep.subr.bf16.mxu1 %v2423_v10  ;;  %1965 = vmatprep.subr.bf16.mxu0 %v2879_v43 }
 0x5da   :  { %1304 = vmatpush1.bf16.msra.mxu1 %v2429_v12  ;;  %1966 = vmatpush3.bf16.msra.mxu0 %v2439_v14 }
 0x5db   :  { %1305 = vmatprep.subr.bf16.mxu1 %v2433_v13  ;;  %1967 = vmatprep.subr.bf16.mxu0 %v2879_v43 }
 0x5de   :  { %1306 = vmatpush1.bf16.msra.mxu1 %v2442_v15  ;;  %1968 = vmatpush3.bf16.msra.mxu0 %v2449_v17 }
 0x5df   :  { %1307 = vmatprep.subr.bf16.mxu1 %v2446_v16  ;;  %1969 = vmatprep.subr.bf16.mxu0 %v2879_v43 }
 0x5e2   :  { %1308 = vmatpush1.bf16.msra.mxu1 %v2452_v18  ;;  %1970 = vmatpush3.bf16.msra.mxu0 %v2460_v20 }
 0x5e3   :  { %1309 = vmatprep.subr.bf16.mxu1 %v2456_v19  ;;  %1971 = vmatprep.subr.bf16.mxu0 %v2879_v43 }
 0x5e6   :  { %1310 = vmatpush1.bf16.msra.mxu1 %v2463_v21  ;;  %1972 = vmatpush3.bf16.msra.mxu0 %v2470_v23 }
 0x5e7   :  { %1311 = vmatprep.subr.bf16.mxu1 %v2467_v22  ;;  %1973 = vmatprep.subr.bf16.mxu0 %v2879_v43 }
 0x5ea   :  { %1312 = vmatpush1.bf16.msra.mxu1 %v2473_v24  ;;  %1974 = vmatpush3.bf16.msra.mxu0 %v2479_v25 }
 0x5eb   :  { %1403 = vmatprep.subr.bf16.mxu1 %v2398_v52  ;;  %1979 = vmatprep.subr.bf16.mxu0 %v2879_v43 }
 0x6a0   :  { %v1225_v47 = vpop.f32.mrb[32].mxu1  ;;  %v1266_v9 = vpop.f32.mrb[32].mxu0 }
 0x6a1   :  { %v1226_v0 = vadd.f32 %v1225_v47, %v2581_v40  ;;  %v1227_v30 = vpop.f32.mrb[33].mxu1  ;;  %v1957_v6 = vpop.f32.mrb[33].mxu0  ;;  %v1267_v29 = vadd.f32 %v1266_v9, %v2589_v37  ;;  %v2183_v47 = vld [vmem:[#allocation6] ss:$12 sps:$4 sm:$0xff]   ;;  %v2184_v9 = vld [vmem:[#allocation6 + $0x8] ss:$12 sps:$4 sm:$0xff]  }
 0x6a2   :  { %v1228_v60 = vadd.f32 %v1227_v30, %v2583_v44  ;;  %v1229_v54 = vpop.f32.mrb[34].mxu1  ;;  %v1269_v58 = vpop.f32.mrb[34].mxu0  ;;  %v2187_v30 = vld [vmem:[#allocation6 + $0x20] ss:$12 sps:$4 sm:$0xff]  }
 0x6a3   :  { %v1272_v26 = vadd.f32 %v1226_v0, %v2562_v32  ;;  %v1230_v5 = vpop.f32.mrb[35].mxu1  ;;  %v1958_v27 = vpop.f32.mrb[35].mxu0  ;;  %v2186_v0 = vld [vmem:[#allocation6 + $0x18] ss:$12 sps:$4 sm:$0xff]   ;;  %v2188_v6 = vld [vmem:[#allocation6 + $0x34] ss:$12 sps:$4 sm:$0xff]  }
 0x6a4   :  { %v1273_v28 = vadd.f32 %v1228_v60, %v2564_v41  ;;  %v2189_v60 = vld [vmem:[#allocation6 + $0x30] ss:$12 sps:$4 sm:$0xff]   ;;  %v2190_v54 = vld [vmem:[#allocation6 + $0x38] ss:$12 sps:$4 sm:$0xff]   ;;  %v2195_v27 = vld [vmem:[#allocation6 + $0x60] ss:$12 sps:$4 sm:$0xff]  }
 0x6a5   :  { %v1707_v48 = vmul.f32 -1.442695, %v1272_v26  ;;  %v2191_v58 = vld [vmem:[#allocation6 + $0x4c] ss:$12 sps:$4 sm:$0xff]   ;;  %v2193_v26 = vld [vmem:[#allocation6 + $0x50] ss:$12 sps:$4 sm:$0xff]  }
 0x6a6   :  { %v1708_v52 = vmul.f32 -1.442695, %v1273_v28  ;;  %v2194_v5 = vld [vmem:[#allocation6 + $0x64] ss:$12 sps:$4 sm:$0xff]   ;;  %v2196_v28 = vld [vmem:[#allocation6 + $0x68] ss:$12 sps:$4 sm:$0xff]  }
 0x6a7   :  { %2142 = vpow2.f32 %v1707_v48  ;;  %v2197_v48 = vld [vmem:[#allocation6 + $0x7c] ss:$12 sps:$4 sm:$0xff]  }
 0x6a8   :  { %2144 = vpow2.f32 %v1708_v52  ;;  %v2198_v52 = vld [vmem:[#allocation6 + $0x78] ss:$12 sps:$4 sm:$0xff]  }
 0x6b1   :  { %v2143_v42 = vpop.eup %2142 }
 0x6b2   :  { %v1280_v46 = vadd.f32 1.0, %v2143_v42  ;;  %v2145_v33 = vpop.eup %2144  ;;  %v2199_v42 = vld [vmem:[#allocation6 + $0x80] ss:$12 sps:$4 sm:$0xff]  }
 0x6b3   :  { %v1281_v56 = vadd.f32 1.0, %v2145_v33  ;;  %v2201_v33 = vld [vmem:[#allocation6 + $0x90] ss:$12 sps:$4 sm:$0xff]  }
 0x6b4   :  { %2146 = vrcp.f32 %v1280_v46  ;;  %v2200_v46 = vld [vmem:[#allocation6 + $0x94] ss:$12 sps:$4 sm:$0xff]  }
 0x6be   :  { %v2147_v53 = vpop.eup %2146 }
 0x6bf   :  { %v1286_v49 = vmul.f32 %v2147_v53, %v1267_v29  ;;  %v2202_v29 = vld [vmem:[#allocation6 + $0x98] ss:$12 sps:$4 sm:$0xff]  }
 0x6c0   :  { %v2203_v53 = vld [vmem:[#allocation6 + $0xac] ss:$12 sps:$4 sm:$0xff]  }
 0x6c1   :  { %v1287_v51 = vadd.f32 %v1286_v49, %v2554_v3  ;;  %v2204_v49 = vld [vmem:[#allocation6 + $0xa8] ss:$12 sps:$4 sm:$0xff]  }
 0x6c3   :  { %2148 = vtanh.f32 %v1287_v51  ;;  %v2205_v51 = vld [vmem:[#allocation6 + $0xb0] ss:$12 sps:$4 sm:$0xff]  }
 0x6c4   :  { %2150 = vrcp.f32 %v1281_v56 }
 0x6cd   :  { %v2149_v32 = vpop.eup %2148 }
 0x6ce   :  { %v1289_v41 = vsub.f32 %v2731_v39, %v2149_v32  ;;  %v2151_v34 = vpop.eup %2150 }
 0x6d0   :  { %v1290_v1 = vmul.f32 %v2151_v34, %v1289_v41 }
 0x6d2   :  { %v2777_v7 = vadd.f32 %v2149_v32, %v1290_v1 }
 0x6d4   :  { %v1296_v36 = vpack.c.bf16 %v2777_v7, %v2777_v7 }
 0x6d6   :  { %1330 = vmatmul.mubr.bf16.vlgmr.msra.gmra.mrb[36].mxu1 %v1296_v36  ;;  %1976 = vmatmul.mubr.bf16.vlgmr.msra.gmra.mrb[36].mxu0 %v1296_v36 }
 0x6d7   :  { %1404 = vmatpush1.bf16.msra.mxu1 %v2402_v59  ;;  %1980 = vmatpush3.bf16.msra.mxu0 %v2406_v62  ;;  %v2182_v59 = vld [vmem:[#allocation6 + $0x4] ss:$12 sps:$4 sm:$0xff]  }
 0x6d8   :  { %1405 = vmatprep.subr.bf16.mxu1 %v2404_v61  ;;  %1981 = vmatprep.subr.bf16.mxu0 %v2879_v43 }
 0x6d9   :  { %1435 = vmatprep.mubr.bf16.mxu1 %v2880_v57  ;;  %1995 = vmatprep.mubr.msk.bf16.mxu0 %vm2285_vm12, %v2879_v43 }
 0x6db   :  { %1406 = vmatpush1.bf16.msra.mxu1 %v2409_v63  ;;  %1982 = vmatpush3.bf16.msra.mxu0 %v2416_v4 }
 0x6dc   :  { %1407 = vmatprep.subr.bf16.mxu1 %v2413_v2  ;;  %1983 = vmatprep.subr.bf16.mxu0 %v2879_v43 }
 0x6df   :  { %1408 = vmatpush1.bf16.msra.mxu1 %v2420_v8  ;;  %1984 = vmatpush3.bf16.msra.mxu0 %v2426_v11 }
 0x6e0   :  { %1409 = vmatprep.subr.bf16.mxu1 %v2423_v10  ;;  %1985 = vmatprep.subr.bf16.mxu0 %v2879_v43 }
 0x6e3   :  { %1410 = vmatpush1.bf16.msra.mxu1 %v2429_v12  ;;  %1986 = vmatpush3.bf16.msra.mxu0 %v2439_v14 }
 0x6e4   :  { %1411 = vmatprep.subr.bf16.mxu1 %v2433_v13  ;;  %1987 = vmatprep.subr.bf16.mxu0 %v2879_v43 }
 0x6e7   :  { %1412 = vmatpush1.bf16.msra.mxu1 %v2442_v15  ;;  %1988 = vmatpush3.bf16.msra.mxu0 %v2449_v17 }
 0x6e8   :  { %1413 = vmatprep.subr.bf16.mxu1 %v2446_v16  ;;  %1989 = vmatprep.subr.bf16.mxu0 %v2879_v43 }
 0x6eb   :  { %1414 = vmatpush1.bf16.msra.mxu1 %v2452_v18  ;;  %1990 = vmatpush3.bf16.msra.mxu0 %v2460_v20 }
 0x6ec   :  { %1415 = vmatprep.subr.bf16.mxu1 %v2456_v19  ;;  %1991 = vmatprep.subr.bf16.mxu0 %v2879_v43 }
 0x6ef   :  { %1416 = vmatpush1.bf16.msra.mxu1 %v2463_v21  ;;  %1992 = vmatpush3.bf16.msra.mxu0 %v2470_v23 }
 0x6f0   :  { %1417 = vmatprep.subr.bf16.mxu1 %v2467_v22  ;;  %1993 = vmatprep.subr.bf16.mxu0 %v2879_v43 }
 0x6f3   :  { %1418 = vmatpush1.bf16.msra.mxu1 %v2473_v24  ;;  %1994 = vmatpush3.bf16.msra.mxu0 %v2479_v25 }
 0x6f4   :  { %1509 = vmatprep.subr.bf16.mxu1 %v2182_v59  ;;  %1999 = vmatprep.subr.bf16.mxu0 %v2879_v43 }
 0x7a9   :  { %v1331_v61 = vpop.f32.mrb[36].mxu1  ;;  %v1372_v62 = vpop.f32.mrb[36].mxu0 }
 0x7aa   :  { %v1332_v63 = vadd.f32 %v1331_v61, %v2581_v40  ;;  %v1333_v2 = vpop.f32.mrb[37].mxu1  ;;  %v1977_v4 = vpop.f32.mrb[37].mxu0  ;;  %v1373_v21 = vadd.f32 %v1372_v62, %v2589_v37 }
 0x7ab   :  { %v1334_v8 = vadd.f32 %v1333_v2, %v2583_v44  ;;  %v1335_v10 = vpop.f32.mrb[38].mxu1  ;;  %v1375_v11 = vpop.f32.mrb[38].mxu0  ;;  %v2881_v2 = vld [vmem:[#allocation14_spill] sm:$0xff] }
 0x7ac   :  { %v1378_v12 = vadd.f32 %v1332_v63, %v2566_v45  ;;  %v1336_v13 = vpop.f32.mrb[39].mxu1  ;;  %v1978_v14 = vpop.f32.mrb[39].mxu0 }
 0x7ad   :  { %v1379_v15 = vadd.f32 %v1334_v8, %v2568_v50 }
 0x7ae   :  { %v1709_v16 = vmul.f32 -1.442695, %v1378_v12 }
 0x7af   :  { %v1710_v17 = vmul.f32 -1.442695, %v1379_v15 }
 0x7b0   :  { %2152 = vpow2.f32 %v1709_v16  ;;  %v2882_v16 = vld [vmem:[#allocation12_spill] sm:$0xff] }
 0x7b1   :  { %2154 = vpow2.f32 %v1710_v17 }
 0x7ba   :  { %v2153_v18 = vpop.eup %2152 }
 0x7bb   :  { %v1386_v19 = vadd.f32 1.0, %v2153_v18  ;;  %v2155_v20 = vpop.eup %2154 }
 0x7bc   :  { %v1387_v25 = vadd.f32 1.0, %v2155_v20 }
 0x7bd   :  { %2156 = vrcp.f32 %v1386_v19 }
 0x7c7   :  { %v2157_v22 = vpop.eup %2156 }
 0x7c8   :  { %v1392_v23 = vmul.f32 %v2157_v22, %v1373_v21 }
 0x7ca   :  { %v1393_v24 = vadd.f32 %v1392_v23, %v2560_v35  ;;  %v2185_v35 = vld [vmem:[#allocation6 + $0x1c] ss:$12 sps:$4 sm:$0xff]  }
 0x7cc   :  { %2158 = vtanh.f32 %v1393_v24 }
 0x7cd   :  { %2160 = vrcp.f32 %v1387_v25 }
 0x7d6   :  { %v2159_v3 = vpop.eup %2158 }
 0x7d7   :  { %v1395_v45 = vsub.f32 %v2777_v7, %v2159_v3  ;;  %v2161_v50 = vpop.eup %2160 }
 0x7d9   :  { %v1396_v38 = vmul.f32 %v2161_v50, %v1395_v45 }
 0x7db   :  { %v2822_v39 = vadd.f32 %v2159_v3, %v1396_v38 }
 0x7dd   :  { %v1402_v31 = vpack.c.bf16 %v2822_v39, %v2822_v39 }
 0x7df   :  { %1436 = vmatmul.mubr.bf16.vlgmr.msra.gmra.mrb[40].mxu1 %v1402_v31  ;;  %1996 = vmatmul.mubr.bf16.vlgmr.msra.gmra.mrb[40].mxu0 %v1402_v31 }
 0x7e0   :  { %1510 = vmatpush1.bf16.msra.mxu1 %v2183_v47  ;;  %2000 = vmatpush3.bf16.msra.mxu0 %v2184_v9  ;;  %v2883_v9 = vld [vmem:[#allocation15_spill] sm:$0xff] }
 0x7e1   :  { %1511 = vmatprep.subr.bf16.mxu1 %v2185_v35  ;;  %2001 = vmatprep.subr.bf16.mxu0 %v2879_v43 }
 0x7e2   :  { %1541 = vmatprep.mubr.bf16.mxu1 %v2880_v57  ;;  %2015 = vmatprep.mubr.msk.bf16.mxu0 %vm2285_vm12, %v2879_v43  ;;  %v2192_v57 = vld [vmem:[#allocation6 + $0x48] ss:$12 sps:$4 sm:$0xff]  }
 0x7e4   :  { %1512 = vmatpush1.bf16.msra.mxu1 %v2186_v0  ;;  %2002 = vmatpush3.bf16.msra.mxu0 %v2187_v30  ;;  %v2884_v30 = vld [vmem:[#allocation16_spill] sm:$0xff] }
 0x7e5   :  { %1513 = vmatprep.subr.bf16.mxu1 %v2188_v6  ;;  %2003 = vmatprep.subr.bf16.mxu0 %v2879_v43 }
 0x7e8   :  { %1514 = vmatpush1.bf16.msra.mxu1 %v2189_v60  ;;  %2004 = vmatpush3.bf16.msra.mxu0 %v2190_v54 }
 0x7e9   :  { %1515 = vmatprep.subr.bf16.mxu1 %v2191_v58  ;;  %2005 = vmatprep.subr.bf16.mxu0 %v2879_v43 }
 0x7ec   :  { %1516 = vmatpush1.bf16.msra.mxu1 %v2192_v57  ;;  %2006 = vmatpush3.bf16.msra.mxu0 %v2193_v26 }
 0x7ed   :  { %1517 = vmatprep.subr.bf16.mxu1 %v2194_v5  ;;  %2007 = vmatprep.subr.bf16.mxu0 %v2879_v43 }
 0x7f0   :  { %1518 = vmatpush1.bf16.msra.mxu1 %v2195_v27  ;;  %2008 = vmatpush3.bf16.msra.mxu0 %v2196_v28  ;;  %v2885_v27 = vld [vmem:[#allocation13_spill] sm:$0xff] }
 0x7f1   :  { %1519 = vmatprep.subr.bf16.mxu1 %v2197_v48  ;;  %2009 = vmatprep.subr.bf16.mxu0 %v2879_v43 }
 0x7f4   :  { %1520 = vmatpush1.bf16.msra.mxu1 %v2198_v52  ;;  %2010 = vmatpush3.bf16.msra.mxu0 %v2199_v42 }
 0x7f5   :  { %1521 = vmatprep.subr.bf16.mxu1 %v2200_v46  ;;  %2011 = vmatprep.subr.bf16.mxu0 %v2879_v43 }
 0x7f8   :  { %1522 = vmatpush1.bf16.msra.mxu1 %v2201_v33  ;;  %2012 = vmatpush3.bf16.msra.mxu0 %v2202_v29 }
 0x7f9   :  { %1523 = vmatprep.subr.bf16.mxu1 %v2203_v53  ;;  %2013 = vmatprep.subr.bf16.mxu0 %v2879_v43 }
 0x7fc   :  { %1524 = vmatpush1.bf16.msra.mxu1 %v2204_v49  ;;  %2014 = vmatpush3.bf16.msra.mxu0 %v2205_v51 }
 0x8b2   :  { %v1437_v56 = vpop.f32.mrb[40].mxu1  ;;  %v1478_v32 = vpop.f32.mrb[40].mxu0 }
 0x8b3   :  { %v1438_v41 = vadd.f32 %v1437_v56, %v2581_v40  ;;  %v1439_v34 = vpop.f32.mrb[41].mxu1  ;;  %v1997_v1 = vpop.f32.mrb[41].mxu0  ;;  %v1479_v13 = vadd.f32 %v1478_v32, %v2589_v37 }
 0x8b4   :  { %v1440_v7 = vadd.f32 %v1439_v34, %v2583_v44  ;;  %v1441_v36 = vpop.f32.mrb[42].mxu1  ;;  %v1481_v59 = vpop.f32.mrb[42].mxu0 }
 0x8b5   :  { %v1484_v61 = vadd.f32 %v1438_v41, %v2570_v55  ;;  %v1442_v62 = vpop.f32.mrb[43].mxu1  ;;  %v1998_v63 = vpop.f32.mrb[43].mxu0 }
 0x8b6   :  { %v1485_v43 = vadd.f32 %v1440_v7, %v2881_v2 }
 0x8b7   :  { %v1711_v4 = vmul.f32 -1.442695, %v1484_v61 }
 0x8b8   :  { %v1712_v8 = vmul.f32 -1.442695, %v1485_v43 }
 0x8b9   :  { %2162 = vpow2.f32 %v1711_v4 }
 0x8ba   :  { %2164 = vpow2.f32 %v1712_v8 }
 0x8c3   :  { %v2163_v10 = vpop.eup %2162 }
 0x8c4   :  { %v1492_v11 = vadd.f32 1.0, %v2163_v10  ;;  %v2165_v12 = vpop.eup %2164 }
 0x8c5   :  { %v1493_v18 = vadd.f32 1.0, %v2165_v12 }
 0x8c6   :  { %2166 = vrcp.f32 %v1492_v11 }
 0x8d0   :  { %v2167_v14 = vpop.eup %2166 }
 0x8d1   :  { %v1498_v15 = vmul.f32 %v2167_v14, %v1479_v13 }
 0x8d3   :  { %v1499_v17 = vadd.f32 %v1498_v15, %v2882_v16 }
 0x8d5   :  { %2168 = vtanh.f32 %v1499_v17 }
 0x8d6   :  { %2170 = vrcp.f32 %v1493_v18 }
 0x8df   :  { %v2169_v55 = vpop.eup %2168 }
 0x8e0   :  { %v1501_v19 = vsub.f32 %v2822_v39, %v2169_v55  ;;  %v2171_v20 = vpop.eup %2170 }
 0x8e2   :  { %v1502_v21 = vmul.f32 %v2171_v20, %v1501_v19 }
 0x8e4   :  { %v1503_v22 = vadd.f32 %v2169_v55, %v1502_v21 }
 0x8e6   :  { %v1508_v23 = vpack.c.bf16 %v1503_v22, %v1503_v22 }
 0x8e8   :  { %1542 = vmatmul.mubr.bf16.vlgmr.msra.gmra.mrb[44].mxu1 %v1508_v23  ;;  %2016 = vmatmul.mubr.bf16.vlgmr.msra.gmra.mrb[44].mxu0 %v1508_v23 }
 0x9bb   :  { %v1543_v24 = vpop.f32.mrb[44].mxu1  ;;  %v1584_v25 = vpop.f32.mrb[44].mxu0 }
 0x9bc   :  { %v1544_v3 = vadd.f32 %v1543_v24, %v2581_v40  ;;  %v1545_v45 = vpop.f32.mrb[45].mxu1  ;;  %v2017_v50 = vpop.f32.mrb[45].mxu0  ;;  %v1585_v26 = vadd.f32 %v1584_v25, %v2589_v37 }
 0x9bd   :  { %v1546_v38 = vadd.f32 %v1545_v45, %v2583_v44  ;;  %v1547_v31 = vpop.f32.mrb[46].mxu1  ;;  %v1587_v47 = vpop.f32.mrb[46].mxu0 }
 0x9be   :  { %v1590_v35 = vadd.f32 %v1544_v3, %v2883_v9  ;;  %v1548_v0 = vpop.f32.mrb[47].mxu1  ;;  %v2018_v39 = vpop.f32.mrb[47].mxu0 }
 0x9bf   :  { %v1591_v6 = vadd.f32 %v1546_v38, %v2884_v30 }
 0x9c0   :  { %v1713_v60 = vmul.f32 -1.442695, %v1590_v35 }
 0x9c1   :  { %v1714_v54 = vmul.f32 -1.442695, %v1591_v6 }
 0x9c2   :  { %2172 = vpow2.f32 %v1713_v60 }
 0x9c3   :  { %2174 = vpow2.f32 %v1714_v54 }
 0x9cc   :  { %v2173_v58 = vpop.eup %2172 }
 0x9cd   :  { %v1598_v57 = vadd.f32 1.0, %v2173_v58  ;;  %v2175_v40 = vpop.eup %2174 }
 0x9ce   :  { %v1599_v48 = vadd.f32 1.0, %v2175_v40 }
 0x9cf   :  { %2176 = vrcp.f32 %v1598_v57 }
 0x9d9   :  { %v2177_v5 = vpop.eup %2176 }
 0x9da   :  { %v1604_v44 = vmul.f32 %v2177_v5, %v1585_v26 }
 0x9dc   :  { %v1605_v28 = vadd.f32 %v1604_v44, %v2885_v27 }
 0x9de   :  { %2178 = vtanh.f32 %v1605_v28 }
 0x9df   :  { %2180 = vrcp.f32 %v1599_v48 }
 0x9e8   :  { %v2179_v52 = vpop.eup %2178 }
 0x9e9   :  { %v1607_v42 = vsub.f32 %v1503_v22, %v2179_v52  ;;  %v2181_v46 = vpop.eup %2180 }
 0x9eb   :  { %v1608_v33 = vmul.f32 %v2181_v46, %v1607_v42 }
 0x9ed   :  { %v1609_v29 = vadd.f32 %v2179_v52, %v1608_v33 }
 0x9ef   :  { %1610 = vst [vmem:[#allocation8] sm:$0xff] %v1609_v29 }
 0x9f0   :  { %2261 = shalt.err (!%p2258_p6)
}
 0x9f1   :  { %s2262_s8 = scalar_lea.hbm %s2867_s6, 128 }
 0x9f2   :  { %p2263_p7 = scmp.ne.s32.totalorder %s2867_s6, %s2262_s8  ;;  %p2266_p8 = scmp.lt.u32.totalorder %s2262_s8, %s2867_s6 }
 0x9f4   :  { %p2268_p9 = pnand %p2266_p8, %p2263_p7 }
 0x9f6   :  { %2271 = shalt.err (!%p2268_p9)
}
 0x9f7   :  { %1620 = dma.vmem_to_hbm [thread:$0]  %s1618_s28, 128, %s2867_s6, [#allocation5]  }
 0x9f8   :  { %2276 = dma.done.wait [#allocation5], 128  }
 0x9f9   :  { %2277 = vsyncadd [#allocation5], 4294967168 }
 0x9fa   :  { %1624 = vsyncpa [#allocation4], 1 }
 0x9fb   :  { %1625 = vsyncpa [#allocation7], 1 }
 0x9fc   :  { %1626 = vsyncpa [#allocation5], 1 }

</bundles_post_ra>
